<compile_context>
chip_gen: v7x
topology: tpu7x:2x2x1
jax: 0.10.0
libtpu: 0.0.40
codegen_flags: <defaults>
</compile_context>

<pallas_src>
import functools
import math

import jax
import jax.numpy as jnp
from jax.experimental import pallas as pl
from jax.experimental.pallas import tpu as pltpu


# ----------------------------------------------------------------------------
# Fused all-layers kernel: grid = (batch, layer)
#   h  = x + Attention(RMSNorm(x))           (rotary emb + causal softmax attn)
#   out = h + W2( silu(W1(RMSNorm(h))) * W3(RMSNorm(h)) )
# ----------------------------------------------------------------------------
def _llama_layers_kernel(x_ref, wq_ref, wk_ref, wv_ref, wo_ref,
                         w1_ref, w2_ref, w3_ref,
                         attn_nw_ref, ffn_nw_ref,
                         cos_ref, sin_ref,
                         out_ref, h_scr, *, n_heads, head_dim, eps):
    l = pl.program_id(1)
    S, D = h_scr.shape
    H, hd = n_heads, head_dim

    # Seed the carried residual stream from the embedding on the first layer.
    @pl.when(l == 0)
    def _():
        h_scr[...] = x_ref[0].astype(jnp.float32)

    x = h_scr[...]                                           # (S, D) fp32

    # --- RMSNorm (attention) ---
    ms = jnp.mean(x * x, axis=-1, keepdims=True)
    xn = x * jax.lax.rsqrt(ms + eps) * attn_nw_ref[0]        # (S, D) fp32
    xn_b = xn.astype(jnp.bfloat16)

    # --- q / k / v projections (bf16 MXU, fp32 accumulation) ---
    q = jnp.dot(xn_b, wq_ref[0], preferred_element_type=jnp.float32)
    k = jnp.dot(xn_b, wk_ref[0], preferred_element_type=jnp.float32)
    v = jnp.dot(xn_b, wv_ref[0], preferred_element_type=jnp.float32)

    q3 = jnp.swapaxes(q.reshape(S, H, hd), 0, 1)             # (H, S, hd)
    k3 = jnp.swapaxes(k.reshape(S, H, hd), 0, 1)
    v3 = jnp.swapaxes(v.reshape(S, H, hd), 0, 1)

    # --- rotary embedding (half-rotation layout; wq/wk columns pre-permuted) ---
    cos = cos_ref[...][None]                                 # (1, S, hd)
    sin = sin_ref[...][None]

    def rope(t):
        t1 = t[..., : hd // 2]
        t2 = t[..., hd // 2:]
        rot = jnp.concatenate([-t2, t1], axis=-1)            # rotate-half
        return t * cos + rot * sin

    q3 = rope(q3)
    k3 = rope(k3)

    # --- causal mask generated in-kernel (no (S,S) HBM input) ---
    row = jax.lax.broadcasted_iota(jnp.int32, (S, S), 0)
    col = jax.lax.broadcasted_iota(jnp.int32, (S, S), 1)
    mask = jnp.where(col > row, -jnp.inf, 0.0).astype(jnp.float32)

    # --- batched multi-head attention (single einsum per stage) ---
    scale = 1.0 / math.sqrt(hd)
    scores = jnp.einsum('bqd,bkd->bqk',
                        q3.astype(jnp.bfloat16), k3.astype(jnp.bfloat16),
                        preferred_element_type=jnp.float32) * scale
    scores = scores + mask[None]                             # (H, S, S) fp32
    m = jnp.max(scores, axis=-1, keepdims=True)
    e = jnp.exp(scores - m)
    probs = e * pl.reciprocal(jnp.sum(e, axis=-1, keepdims=True), approx=True)

    ctx = jnp.einsum('bqk,bkd->bqd',
                     probs.astype(jnp.bfloat16), v3.astype(jnp.bfloat16),
                     preferred_element_type=jnp.float32)     # (H, S, hd)
    ctx = jnp.swapaxes(ctx, 0, 1).reshape(S, D)

    # --- single fused output projection ---
    attn = jnp.dot(ctx.astype(jnp.bfloat16), wo_ref[0],
                   preferred_element_type=jnp.float32)
    h1 = x + attn

    # --- RMSNorm (ffn) + SwiGLU feed-forward ---
    ms2 = jnp.mean(h1 * h1, axis=-1, keepdims=True)
    hn = h1 * jax.lax.rsqrt(ms2 + eps) * ffn_nw_ref[0]
    hn_b = hn.astype(jnp.bfloat16)
    g = jnp.dot(hn_b, w1_ref[0], preferred_element_type=jnp.float32)
    u = jnp.dot(hn_b, w3_ref[0], preferred_element_type=jnp.float32)
    act = (g * jax.nn.sigmoid(g) * u).astype(jnp.bfloat16)   # silu(w1 x) * (w3 x)
    ff = jnp.dot(act, w2_ref[0], preferred_element_type=jnp.float32)

    h_scr[...] = h1 + ff

    @pl.when(l == pl.num_programs(1) - 1)
    def _():
        out_ref[0] = h_scr[...].astype(out_ref.dtype)


def llama_layers(x, wq, wk, wv, wo, w1, w2, w3, attn_nw, ffn_nw, cos, sin,
                 *, n_heads, eps):
    B, S, D = x.shape
    L = wq.shape[0]
    Hf = w1.shape[2]
    hd = D // n_heads
    kern = functools.partial(_llama_layers_kernel,
                             n_heads=n_heads, head_dim=hd, eps=eps)

    def wspec(shape):  # per-layer weight block, indexed by the layer grid axis
        return pl.BlockSpec((1,) + shape, lambda b, l: (l,) + (0,) * len(shape))

    def cspec(shape):  # constant (layer/batch-independent) block
        return pl.BlockSpec(shape, lambda b, l: (0,) * len(shape))

    return pl.pallas_call(
        kern,
        out_shape=jax.ShapeDtypeStruct((B, S, D), jnp.float32),
        grid=(B, L),
        in_specs=[
            pl.BlockSpec((1, S, D), lambda b, l: (b, 0, 0)),   # x (embeddings)
            wspec((D, D)), wspec((D, D)),                       # wq, wk
            wspec((D, D)), wspec((D, D)),                       # wv, wo
            wspec((D, Hf)), wspec((Hf, D)), wspec((D, Hf)),     # w1, w2, w3
            wspec((1, D)), wspec((1, D)),                       # attn / ffn norm
            cspec((S, hd)), cspec((S, hd)),                     # cos, sin
        ],
        out_specs=pl.BlockSpec((1, S, D), lambda b, l: (b, 0, 0)),
        scratch_shapes=[pltpu.VMEM((S, D), jnp.float32)],       # carried residual
        compiler_params=pltpu.CompilerParams(
            dimension_semantics=("parallel", "arbitrary")),
    )(x, wq, wk, wv, wo, w1, w2, w3, attn_nw, ffn_nw, cos, sin)


# ----------------------------------------------------------------------------
# Final RMSNorm + LM head kernel, tiled over the vocab axis:
#   logits[:, :, j*tv:(j+1)*tv] = RMSNorm(h) @ W_out[:, j*tv:(j+1)*tv]
# ----------------------------------------------------------------------------
def _final_kernel(h_ref, nw_ref, wout_ref, out_ref, *, eps):
    x = h_ref[0].astype(jnp.float32)
    ms = jnp.mean(x * x, axis=-1, keepdims=True)
    xn = (x * jax.lax.rsqrt(ms + eps) * nw_ref[...]).astype(jnp.bfloat16)
    out_ref[0] = jnp.dot(xn, wout_ref[...],
                         preferred_element_type=jnp.float32).astype(out_ref.dtype)


def _pick_vocab_tile(V):
    for tv in (2048, 1024, 512, 256, 128):
        if V % tv == 0:
            return tv
    return V  # small vocab: single full-width tile


def final_projection(h, norm_w, w_out, *, eps):
    B, S, D = h.shape
    V = w_out.shape[1]
    tv = _pick_vocab_tile(V)
    kern = functools.partial(_final_kernel, eps=eps)
    return pl.pallas_call(
        kern,
        out_shape=jax.ShapeDtypeStruct((B, S, V), jnp.float32),
        grid=(B, V // tv),
        in_specs=[
            pl.BlockSpec((1, S, D), lambda b, j: (b, 0, 0)),
            pl.BlockSpec((1, D), lambda b, j: (0, 0)),
            pl.BlockSpec((D, tv), lambda b, j: (0, j)),
        ],
        out_specs=pl.BlockSpec((1, S, tv), lambda b, j: (b, 0, j)),
        compiler_params=pltpu.CompilerParams(
            dimension_semantics=("parallel", "parallel")),
    )(h, norm_w.reshape(1, D), w_out)


# ----------------------------------------------------------------------------
# Model assembly (glue in plain JAX: embedding gather, rotary tables,
# weight stacking / bf16 cast / rotary column permutation)
# ----------------------------------------------------------------------------
def llama_forward(tokens, params, *, n_heads, eps):
    B, S = tokens.shape
    D = params["tok_embeddings"].shape[1]
    hd = D // n_heads
    L = len(params["layers"])

    # token embedding lookup (glue; ParallelEmbedding with world_size=1)
    h = params["tok_embeddings"][tokens].astype(jnp.float32)        # (B, S, D)

    # precompute_freqs_cis(head_dim, ...)[0:S]  (theta = 10000)
    inv_freq = 1.0 / (10000.0 ** (jnp.arange(0, hd, 2, dtype=jnp.float32) / hd))
    ang = jnp.outer(jnp.arange(S, dtype=jnp.float32), inv_freq)     # (S, hd/2)
    cos = jnp.concatenate([jnp.cos(ang), jnp.cos(ang)], axis=-1)    # (S, hd)
    sin = jnp.concatenate([jnp.sin(ang), jnp.sin(ang)], axis=-1)    # (S, hd)

    # Column permutation (per head) of wq/wk: interleaved complex pairs ->
    # half-rotation layout. Per-head q.k dot products are invariant under the
    # shared permutation, so forward semantics are unchanged.
    i = jnp.arange(hd // 2)
    within = jnp.concatenate([2 * i, 2 * i + 1])                    # (hd,)
    perm = (jnp.arange(n_heads)[:, None] * hd + within[None, :]).reshape(-1)

    stack = lambda name: jnp.stack([lyr[name] for lyr in params["layers"]])
    wq = stack("wq")[:, :, perm].astype(jnp.bfloat16)
    wk = stack("wk")[:, :, perm].astype(jnp.bfloat16)
    wv = stack("wv").astype(jnp.bfloat16)
    wo = stack("wo").astype(jnp.bfloat16)
    w1 = stack("w1").astype(jnp.bfloat16)
    w2 = stack("w2").astype(jnp.bfloat16)
    w3 = stack("w3").astype(jnp.bfloat16)
    attn_nw = stack("attn_norm").reshape(L, 1, D).astype(jnp.float32)
    ffn_nw = stack("ffn_norm").reshape(L, 1, D).astype(jnp.float32)

    h = llama_layers(h, wq, wk, wv, wo, w1, w2, w3, attn_nw, ffn_nw,
                     cos, sin, n_heads=n_heads, eps=eps)

    return final_projection(h, params["norm"],
                            params["output"].astype(jnp.bfloat16), eps=eps)


def init_params(key, *, vocab, dim, n_layers, hidden, scale=0.02):
    keys = jax.random.split(key, 2 + 7 * n_layers)
    params = {
        "tok_embeddings": scale * jax.random.normal(keys[0], (vocab, dim), jnp.float32),
        "output": scale * jax.random.normal(keys[1], (dim, vocab), jnp.float32),
        "norm": jnp.ones((dim,), jnp.float32),
        "layers": [],
    }
    for i in range(n_layers):
        k = keys[2 + 7 * i: 2 + 7 * (i + 1)]
        params["layers"].append({
            "wq": scale * jax.random.normal(k[0], (dim, dim), jnp.float32),
            "wk": scale * jax.random.normal(k[1], (dim, dim), jnp.float32),
            "wv": scale * jax.random.normal(k[2], (dim, dim), jnp.float32),
            "wo": scale * jax.random.normal(k[3], (dim, dim), jnp.float32),
            "w1": scale * jax.random.normal(k[4], (dim, hidden), jnp.float32),
            "w2": scale * jax.random.normal(k[5], (hidden, dim), jnp.float32),
            "w3": scale * jax.random.normal(k[6], (dim, hidden), jnp.float32),
            "attn_norm": jnp.ones((dim,), jnp.float32),
            "ffn_norm": jnp.ones((dim,), jnp.float32),
        })
    return params


if __name__ == "__main__":
    # Small, self-consistent ModelArgs
    B, S = 2, 8
    DIM, N_HEADS, N_LAYERS = 32, 4, 2
    VOCAB, MULTIPLE_OF, EPS = 64, 32, 1e-6
    # FeedForward hidden size: multiple_of * ceil((2*(4*dim)/3) / multiple_of)
    HIDDEN = MULTIPLE_OF * ((int(2 * (4 * DIM) / 3) + MULTIPLE_OF - 1) // MULTIPLE_OF)

    key = jax.random.PRNGKey(0)
    k_params, k_tok = jax.random.split(key)
    params = init_params(k_params, vocab=VOCAB, dim=DIM,
                         n_layers=N_LAYERS, hidden=HIDDEN)
    tokens = jax.random.randint(k_tok, (B, S), 0, VOCAB, dtype=jnp.int32)

    logits = llama_forward(tokens, params, n_heads=N_HEADS, eps=EPS)
    jax.block_until_ready(logits)
    assert logits.shape == (B, S, VOCAB) and logits.dtype == jnp.float32
    assert bool(jnp.all(jnp.isfinite(logits)))
    print("KERNEL_OK")
</pallas_src>

<mosaic_0001>
module attributes {stable_mosaic.version = 11 : i64} {
  func.func @_llama_layers_kernel(%arg0: i32, %arg1: i32, %arg2: memref<1x8x32xf32, #tpu.memory_space<vmem>>, %arg3: memref<1x32x32xbf16, #tpu.memory_space<vmem>>, %arg4: memref<1x32x32xbf16, #tpu.memory_space<vmem>>, %arg5: memref<1x32x32xbf16, #tpu.memory_space<vmem>>, %arg6: memref<1x32x32xbf16, #tpu.memory_space<vmem>>, %arg7: memref<1x32x96xbf16, #tpu.memory_space<vmem>>, %arg8: memref<1x96x32xbf16, #tpu.memory_space<vmem>>, %arg9: memref<1x32x96xbf16, #tpu.memory_space<vmem>>, %arg10: memref<1x1x32xf32, #tpu.memory_space<vmem>>, %arg11: memref<1x1x32xf32, #tpu.memory_space<vmem>>, %arg12: memref<8x8xf32, #tpu.memory_space<vmem>>, %arg13: memref<8x8xf32, #tpu.memory_space<vmem>>, %arg14: memref<1x8x32xf32, #tpu.memory_space<vmem>>, %arg15: memref<8x32xf32, #tpu.memory_space<vmem>>) attributes {dimension_semantics = [#tpu.dimension_semantics<parallel>, #tpu.dimension_semantics<arbitrary>], iteration_bounds = array<i64: 2, 2>, scalar_prefetch = 0 : i64, scratch_operands = 1 : i64, tpu.core_type = #tpu.core_type<tc>, window_params = [{transform_indices = @transform_0, window_bounds = array<i64: 1, 8, 32>}, {transform_indices = @transform_1, window_bounds = array<i64: 1, 32, 32>}, {transform_indices = @transform_2, window_bounds = array<i64: 1, 32, 32>}, {transform_indices = @transform_3, window_bounds = array<i64: 1, 32, 32>}, {transform_indices = @transform_4, window_bounds = array<i64: 1, 32, 32>}, {transform_indices = @transform_5, window_bounds = array<i64: 1, 32, 96>}, {transform_indices = @transform_6, window_bounds = array<i64: 1, 96, 32>}, {transform_indices = @transform_7, window_bounds = array<i64: 1, 32, 96>}, {transform_indices = @transform_8, window_bounds = array<i64: 1, 1, 32>}, {transform_indices = @transform_9, window_bounds = array<i64: 1, 1, 32>}, {pipeline_mode = #tpu.pipeline_mode<synchronous>, transform_indices = @transform_10, window_bounds = array<i64: 8, 8>}, {pipeline_mode = #tpu.pipeline_mode<synchronous>, transform_indices = @transform_11, window_bounds = array<i64: 8, 8>}, {transform_indices = @transform_12, window_bounds = array<i64: 1, 8, 32>}]} {
    %c0_i32 = arith.constant 0 : i32
    %0 = arith.cmpi eq, %arg1, %c0_i32 : i32
    %1 = arith.extui %0 : i1 to i32
    %c0_i32_0 = arith.constant 0 : i32
    %2 = arith.cmpi ne, %1, %c0_i32_0 : i32
    scf.if %2 {
      %c0_58 = arith.constant 0 : index
      %c0_59 = arith.constant 0 : index
      %c0_60 = arith.constant 0 : index
      %129 = vector.load %arg2[%c0_58, %c0_59, %c0_60] : memref<1x8x32xf32, #tpu.memory_space<vmem>>, vector<1x8x32xf32>
      %130 = vector.shape_cast %129 : vector<1x8x32xf32> to vector<8x32xf32>
      %c0_61 = arith.constant 0 : index
      %c0_62 = arith.constant 0 : index
      %131 = vector.load %arg15[%c0_61, %c0_62] : memref<8x32xf32, #tpu.memory_space<vmem>>, vector<8x32xf32>
      tpu.vector_store %arg15[%c0_61, %c0_62], %130 {strides = array<i32>} : memref<8x32xf32, #tpu.memory_space<vmem>>, vector<8x32xf32>,
    } else {
    }
    %c0 = arith.constant 0 : index
    %c0_1 = arith.constant 0 : index
    %3 = vector.load %arg15[%c0, %c0_1] : memref<8x32xf32, #tpu.memory_space<vmem>>, vector<8x32xf32>
    %4 = arith.mulf %3, %3 : vector<8x32xf32>
    %cst = arith.constant dense<0.000000e+00> : vector<8xf32>
    %5 = vector.multi_reduction <add>, %4, %cst [1] : vector<8x32xf32> to vector<8xf32>
    %6 = vector.shape_cast %5 : vector<8xf32> to vector<8x1xf32>
    %cst_2 = arith.constant 3.200000e+01 : f32
    %7 = vector.broadcast %cst_2 : f32 to vector<8x1xf32>
    %8 = arith.divf %6, %7 : vector<8x1xf32>
    %cst_3 = arith.constant 9.99999997E-7 : f32
    %9 = vector.broadcast %cst_3 : f32 to vector<8x1xf32>
    %10 = arith.addf %8, %9 : vector<8x1xf32>
    %11 = math.rsqrt %10 : vector<8x1xf32>
    %12 = vector.broadcast %11 : vector<8x1xf32> to vector<8x32xf32>
    %13 = arith.mulf %3, %12 : vector<8x32xf32>
    %c0_4 = arith.constant 0 : index
    %c0_5 = arith.constant 0 : index
    %c0_6 = arith.constant 0 : index
    %14 = vector.load %arg10[%c0_4, %c0_5, %c0_6] : memref<1x1x32xf32, #tpu.memory_space<vmem>>, vector<1x1x32xf32>
    %15 = vector.shape_cast %14 : vector<1x1x32xf32> to vector<1x32xf32>
    %16 = vector.broadcast %15 : vector<1x32xf32> to vector<8x32xf32>
    %17 = arith.mulf %13, %16 : vector<8x32xf32>
    %18 = arith.truncf %17 : vector<8x32xf32> to vector<8x32xbf16>
    %c0_7 = arith.constant 0 : index
    %c0_8 = arith.constant 0 : index
    %c0_9 = arith.constant 0 : index
    %19 = vector.load %arg3[%c0_7, %c0_8, %c0_9] : memref<1x32x32xbf16, #tpu.memory_space<vmem>>, vector<1x32x32xbf16>
    %20 = vector.shape_cast %19 : vector<1x32x32xbf16> to vector<32x32xbf16>
    %cst_10 = arith.constant dense<0.000000e+00> : vector<8x32xf32>
    %21 = tpu.matmul %18, %20, %cst_10 {dimension_numbers = #tpu.dot_dimension_numbers<[1], [0], [0], [1], [0, 0, 1, 1], [], []>} : vector<8x32xbf16>, vector<32x32xbf16>, vector<8x32xf32> -> vector<8x32xf32>
    %c0_11 = arith.constant 0 : index
    %c0_12 = arith.constant 0 : index
    %c0_13 = arith.constant 0 : index
    %22 = vector.load %arg4[%c0_11, %c0_12, %c0_13] : memref<1x32x32xbf16, #tpu.memory_space<vmem>>, vector<1x32x32xbf16>
    %23 = vector.shape_cast %22 : vector<1x32x32xbf16> to vector<32x32xbf16>
    %cst_14 = arith.constant dense<0.000000e+00> : vector<8x32xf32>
    %24 = tpu.matmul %18, %23, %cst_14 {dimension_numbers = #tpu.dot_dimension_numbers<[1], [0], [0], [1], [0, 0, 1, 1], [], []>} : vector<8x32xbf16>, vector<32x32xbf16>, vector<8x32xf32> -> vector<8x32xf32>
    %c0_15 = arith.constant 0 : index
    %c0_16 = arith.constant 0 : index
    %c0_17 = arith.constant 0 : index
    %25 = vector.load %arg5[%c0_15, %c0_16, %c0_17] : memref<1x32x32xbf16, #tpu.memory_space<vmem>>, vector<1x32x32xbf16>
    %26 = vector.shape_cast %25 : vector<1x32x32xbf16> to vector<32x32xbf16>
    %cst_18 = arith.constant dense<0.000000e+00> : vector<8x32xf32>
    %27 = tpu.matmul %18, %26, %cst_18 {dimension_numbers = #tpu.dot_dimension_numbers<[1], [0], [0], [1], [0, 0, 1, 1], [], []>} : vector<8x32xbf16>, vector<32x32xbf16>, vector<8x32xf32> -> vector<8x32xf32>
    %28 = vector.shape_cast %21 : vector<8x32xf32> to vector<8x4x8xf32>
    %29 = tpu.transpose %28, [1, 0, 2] : vector<8x4x8xf32> -> vector<4x8x8xf32>
    %30 = vector.shape_cast %24 : vector<8x32xf32> to vector<8x4x8xf32>
    %31 = tpu.transpose %30, [1, 0, 2] : vector<8x4x8xf32> -> vector<4x8x8xf32>
    %32 = vector.shape_cast %27 : vector<8x32xf32> to vector<8x4x8xf32>
    %33 = tpu.transpose %32, [1, 0, 2] : vector<8x4x8xf32> -> vector<4x8x8xf32>
    %c0_19 = arith.constant 0 : index
    %c0_20 = arith.constant 0 : index
    %34 = vector.load %arg12[%c0_19, %c0_20] : memref<8x8xf32, #tpu.memory_space<vmem>>, vector<8x8xf32>
    %35 = vector.shape_cast %34 : vector<8x8xf32> to vector<1x8x8xf32>
    %c0_21 = arith.constant 0 : index
    %c0_22 = arith.constant 0 : index
    %36 = vector.load %arg13[%c0_21, %c0_22] : memref<8x8xf32, #tpu.memory_space<vmem>>, vector<8x8xf32>
    %37 = vector.shape_cast %36 : vector<8x8xf32> to vector<1x8x8xf32>
    %38 = vector.extract_strided_slice %29 {offsets = [0, 0, 0], sizes = [4, 8, 4], strides = [1, 1, 1]} : vector<4x8x8xf32> to vector<4x8x4xf32>
    %39 = vector.extract_strided_slice %29 {offsets = [0, 0, 4], sizes = [4, 8, 4], strides = [1, 1, 1]} : vector<4x8x8xf32> to vector<4x8x4xf32>
    %cst_23 = arith.constant 0.000000e+00 : f32
    %40 = vector.broadcast %cst_23 : f32 to vector<4x8x4xf32>
    %41 = arith.subf %40, %39 : vector<4x8x4xf32>
    %42 = tpu.concatenate %41, %38 in 2 : vector<4x8x4xf32>, vector<4x8x4xf32> -> vector<4x8x8xf32>
    %43 = vector.broadcast %35 : vector<1x8x8xf32> to vector<4x8x8xf32>
    %44 = arith.mulf %29, %43 : vector<4x8x8xf32>
    %45 = vector.broadcast %37 : vector<1x8x8xf32> to vector<4x8x8xf32>
    %46 = arith.mulf %42, %45 : vector<4x8x8xf32>
    %47 = arith.addf %44, %46 : vector<4x8x8xf32>
    %48 = vector.extract_strided_slice %31 {offsets = [0, 0, 0], sizes = [4, 8, 4], strides = [1, 1, 1]} : vector<4x8x8xf32> to vector<4x8x4xf32>
    %49 = vector.extract_strided_slice %31 {offsets = [0, 0, 4], sizes = [4, 8, 4], strides = [1, 1, 1]} : vector<4x8x8xf32> to vector<4x8x4xf32>
    %cst_24 = arith.constant 0.000000e+00 : f32
    %50 = vector.broadcast %cst_24 : f32 to vector<4x8x4xf32>
    %51 = arith.subf %50, %49 : vector<4x8x4xf32>
    %52 = tpu.concatenate %51, %48 in 2 : vector<4x8x4xf32>, vector<4x8x4xf32> -> vector<4x8x8xf32>
    %53 = vector.broadcast %35 : vector<1x8x8xf32> to vector<4x8x8xf32>
    %54 = arith.mulf %31, %53 : vector<4x8x8xf32>
    %55 = vector.broadcast %37 : vector<1x8x8xf32> to vector<4x8x8xf32>
    %56 = arith.mulf %52, %55 : vector<4x8x8xf32>
    %57 = arith.addf %54, %56 : vector<4x8x8xf32>
    %58 = tpu.iota {dimensions = array<i32: 0>} : vector<8x8xi32>
    %59 = tpu.iota {dimensions = array<i32: 1>} : vector<8x8xi32>
    %60 = arith.cmpi sgt, %59, %58 : vector<8x8xi32>
    %cst_25 = arith.constant 0xFF800000 : f32
    %cst_26 = arith.constant 0.000000e+00 : f32
    %61 = vector.broadcast %cst_25 : f32 to vector<8x8xf32>
    %62 = vector.broadcast %cst_26 : f32 to vector<8x8xf32>
    %63 = arith.select %60, %61, %62 : vector<8x8xi1>, vector<8x8xf32>
    %64 = arith.truncf %47 : vector<4x8x8xf32> to vector<4x8x8xbf16>
    %65 = arith.truncf %57 : vector<4x8x8xf32> to vector<4x8x8xbf16>
    "tpu.trace_start"() <{level = 10 : i32, message = "bqd,bkd->bqk"}> : () -> ()
    %cst_27 = arith.constant dense<0.000000e+00> : vector<4x8x8xf32>
    %66 = tpu.matmul %64, %65, %cst_27 {dimension_numbers = #tpu.dot_dimension_numbers<[2], [2], [1], [1], [0, 0, 0, 1, 1, 1], [0], [0]>} : vector<4x8x8xbf16>, vector<4x8x8xbf16>, vector<4x8x8xf32> -> vector<4x8x8xf32>
    "tpu.trace_stop"() : () -> ()
    %cst_28 = arith.constant 0.353553385 : f32
    %67 = vector.broadcast %cst_28 : f32 to vector<4x8x8xf32>
    %68 = arith.mulf %66, %67 : vector<4x8x8xf32>
    %69 = vector.shape_cast %63 : vector<8x8xf32> to vector<1x8x8xf32>
    %70 = vector.broadcast %69 : vector<1x8x8xf32> to vector<4x8x8xf32>
    %71 = arith.addf %68, %70 : vector<4x8x8xf32>
    %cst_29 = arith.constant dense<0xFF800000> : vector<4x8xf32>
    %72 = vector.multi_reduction <maximumf>, %71, %cst_29 [2] : vector<4x8x8xf32> to vector<4x8xf32>
    %73 = vector.shape_cast %72 : vector<4x8xf32> to vector<4x8x1xf32>
    %74 = vector.broadcast %73 : vector<4x8x1xf32> to vector<4x8x8xf32>
    %75 = arith.subf %71, %74 : vector<4x8x8xf32>
    %76 = math.exp %75 : vector<4x8x8xf32>
    %cst_30 = arith.constant dense<0.000000e+00> : vector<4x8xf32>
    %77 = vector.multi_reduction <add>, %76, %cst_30 [2] : vector<4x8x8xf32> to vector<4x8xf32>
    %78 = vector.shape_cast %77 : vector<4x8xf32> to vector<4x8x1xf32>
    %79 = tpu.reciprocal %78 {approx = true} : vector<4x8x1xf32> -> vector<4x8x1xf32>
    %80 = vector.broadcast %79 : vector<4x8x1xf32> to vector<4x8x8xf32>
    %81 = arith.mulf %76, %80 : vector<4x8x8xf32>
    %82 = arith.truncf %81 : vector<4x8x8xf32> to vector<4x8x8xbf16>
    %83 = arith.truncf %33 : vector<4x8x8xf32> to vector<4x8x8xbf16>
    "tpu.trace_start"() <{level = 10 : i32, message = "bqk,bkd->bqd"}> : () -> ()
    %cst_31 = arith.constant dense<0.000000e+00> : vector<4x8x8xf32>
    %84 = tpu.matmul %82, %83, %cst_31 {dimension_numbers = #tpu.dot_dimension_numbers<[2], [1], [1], [2], [0, 0, 0, 1, 1, 2], [0], [0]>} : vector<4x8x8xbf16>, vector<4x8x8xbf16>, vector<4x8x8xf32> -> vector<4x8x8xf32>
    "tpu.trace_stop"() : () -> ()
    %85 = tpu.transpose %84, [1, 0, 2] : vector<4x8x8xf32> -> vector<8x4x8xf32>
    %86 = vector.shape_cast %85 : vector<8x4x8xf32> to vector<8x32xf32>
    %87 = arith.truncf %86 : vector<8x32xf32> to vector<8x32xbf16>
    %c0_32 = arith.constant 0 : index
    %c0_33 = arith.constant 0 : index
    %c0_34 = arith.constant 0 : index
    %88 = vector.load %arg6[%c0_32, %c0_33, %c0_34] : memref<1x32x32xbf16, #tpu.memory_space<vmem>>, vector<1x32x32xbf16>
    %89 = vector.shape_cast %88 : vector<1x32x32xbf16> to vector<32x32xbf16>
    %cst_35 = arith.constant dense<0.000000e+00> : vector<8x32xf32>
    %90 = tpu.matmul %87, %89, %cst_35 {dimension_numbers = #tpu.dot_dimension_numbers<[1], [0], [0], [1], [0, 0, 1, 1], [], []>} : vector<8x32xbf16>, vector<32x32xbf16>, vector<8x32xf32> -> vector<8x32xf32>
    %91 = arith.addf %3, %90 : vector<8x32xf32>
    %92 = arith.mulf %91, %91 : vector<8x32xf32>
    %cst_36 = arith.constant dense<0.000000e+00> : vector<8xf32>
    %93 = vector.multi_reduction <add>, %92, %cst_36 [1] : vector<8x32xf32> to vector<8xf32>
    %94 = vector.shape_cast %93 : vector<8xf32> to vector<8x1xf32>
    %cst_37 = arith.constant 3.200000e+01 : f32
    %95 = vector.broadcast %cst_37 : f32 to vector<8x1xf32>
    %96 = arith.divf %94, %95 : vector<8x1xf32>
    %cst_38 = arith.constant 9.99999997E-7 : f32
    %97 = vector.broadcast %cst_38 : f32 to vector<8x1xf32>
    %98 = arith.addf %96, %97 : vector<8x1xf32>
    %99 = math.rsqrt %98 : vector<8x1xf32>
    %100 = vector.broadcast %99 : vector<8x1xf32> to vector<8x32xf32>
    %101 = arith.mulf %91, %100 : vector<8x32xf32>
    %c0_39 = arith.constant 0 : index
    %c0_40 = arith.constant 0 : index
    %c0_41 = arith.constant 0 : index
    %102 = vector.load %arg11[%c0_39, %c0_40, %c0_41] : memref<1x1x32xf32, #tpu.memory_space<vmem>>, vector<1x1x32xf32>
    %103 = vector.shape_cast %102 : vector<1x1x32xf32> to vector<1x32xf32>
    %104 = vector.broadcast %103 : vector<1x32xf32> to vector<8x32xf32>
    %105 = arith.mulf %101, %104 : vector<8x32xf32>
    %106 = arith.truncf %105 : vector<8x32xf32> to vector<8x32xbf16>
    %c0_42 = arith.constant 0 : index
    %c0_43 = arith.constant 0 : index
    %c0_44 = arith.constant 0 : index
    %107 = vector.load %arg7[%c0_42, %c0_43, %c0_44] : memref<1x32x96xbf16, #tpu.memory_space<vmem>>, vector<1x32x96xbf16>
    %108 = vector.shape_cast %107 : vector<1x32x96xbf16> to vector<32x96xbf16>
    %cst_45 = arith.constant dense<0.000000e+00> : vector<8x96xf32>
    %109 = tpu.matmul %106, %108, %cst_45 {dimension_numbers = #tpu.dot_dimension_numbers<[1], [0], [0], [1], [0, 0, 1, 1], [], []>} : vector<8x32xbf16>, vector<32x96xbf16>, vector<8x96xf32> -> vector<8x96xf32>
    %c0_46 = arith.constant 0 : index
    %c0_47 = arith.constant 0 : index
    %c0_48 = arith.constant 0 : index
    %110 = vector.load %arg9[%c0_46, %c0_47, %c0_48] : memref<1x32x96xbf16, #tpu.memory_space<vmem>>, vector<1x32x96xbf16>
    %111 = vector.shape_cast %110 : vector<1x32x96xbf16> to vector<32x96xbf16>
    %cst_49 = arith.constant dense<0.000000e+00> : vector<8x96xf32>
    %112 = tpu.matmul %106, %111, %cst_49 {dimension_numbers = #tpu.dot_dimension_numbers<[1], [0], [0], [1], [0, 0, 1, 1], [], []>} : vector<8x32xbf16>, vector<32x96xbf16>, vector<8x96xf32> -> vector<8x96xf32>
    %113 = arith.negf %109 : vector<8x96xf32>
    %114 = math.exp %113 : vector<8x96xf32>
    %cst_50 = arith.constant 1.000000e+00 : f32
    %115 = vector.broadcast %cst_50 : f32 to vector<8x96xf32>
    %116 = arith.addf %115, %114 : vector<8x96xf32>
    %117 = arith.divf %115, %116 : vector<8x96xf32>
    %118 = arith.mulf %109, %117 : vector<8x96xf32>
    %119 = arith.mulf %118, %112 : vector<8x96xf32>
    %120 = arith.truncf %119 : vector<8x96xf32> to vector<8x96xbf16>
    %c0_51 = arith.constant 0 : index
    %c0_52 = arith.constant 0 : index
    %c0_53 = arith.constant 0 : index
    %121 = vector.load %arg8[%c0_51, %c0_52, %c0_53] : memref<1x96x32xbf16, #tpu.memory_space<vmem>>, vector<1x96x32xbf16>
    %122 = vector.shape_cast %121 : vector<1x96x32xbf16> to vector<96x32xbf16>
    %cst_54 = arith.constant dense<0.000000e+00> : vector<8x32xf32>
    %123 = tpu.matmul %120, %122, %cst_54 {dimension_numbers = #tpu.dot_dimension_numbers<[1], [0], [0], [1], [0, 0, 1, 1], [], []>} : vector<8x96xbf16>, vector<96x32xbf16>, vector<8x32xf32> -> vector<8x32xf32>
    %124 = arith.addf %91, %123 : vector<8x32xf32>
    %c0_55 = arith.constant 0 : index
    %c0_56 = arith.constant 0 : index
    %125 = vector.load %arg15[%c0_55, %c0_56] : memref<8x32xf32, #tpu.memory_space<vmem>>, vector<8x32xf32>
    tpu.vector_store %arg15[%c0_55, %c0_56], %124 {strides = array<i32>} : memref<8x32xf32, #tpu.memory_space<vmem>>, vector<8x32xf32>,
    %c1_i32 = arith.constant 1 : i32
    %126 = arith.cmpi eq, %arg1, %c1_i32 : i32
    %127 = arith.extui %126 : i1 to i32
    %c0_i32_57 = arith.constant 0 : i32
    %128 = arith.cmpi ne, %127, %c0_i32_57 : i32
    scf.if %128 {
      %c0_58 = arith.constant 0 : index
      %c0_59 = arith.constant 0 : index
      %129 = vector.load %arg15[%c0_58, %c0_59] : memref<8x32xf32, #tpu.memory_space<vmem>>, vector<8x32xf32>
      %c0_60 = arith.constant 0 : index
      %c0_61 = arith.constant 0 : index
      %c0_62 = arith.constant 0 : index
      %130 = vector.load %arg14[%c0_60, %c0_61, %c0_62] : memref<1x8x32xf32, #tpu.memory_space<vmem>>, vector<1x8x32xf32>
      %131 = vector.shape_cast %130 : vector<1x8x32xf32> to vector<8x32xf32>
      %132 = vector.shape_cast %129 : vector<8x32xf32> to vector<1x8x32xf32>
      tpu.vector_store %arg14[%c0_60, %c0_61, %c0_62], %132 {strides = array<i32>} : memref<1x8x32xf32, #tpu.memory_space<vmem>>, vector<1x8x32xf32>,
    } else {
    }
    return
  }
  func.func @transform_0(%arg0: i32, %arg1: i32) -> (i32, i32, i32) {
    %c0_i32 = arith.constant 0 : i32
    %c0_i32_0 = arith.constant 0 : i32
    %c0_i32_1 = arith.constant 0 : i32
    return %arg0, %c0_i32, %c0_i32_0 : i32, i32, i32
  }
  func.func @transform_1(%arg0: i32, %arg1: i32) -> (i32, i32, i32) {
    %c0_i32 = arith.constant 0 : i32
    %c0_i32_0 = arith.constant 0 : i32
    %c0_i32_1 = arith.constant 0 : i32
    return %arg1, %c0_i32, %c0_i32_0 : i32, i32, i32
  }
  func.func @transform_2(%arg0: i32, %arg1: i32) -> (i32, i32, i32) {
    %c0_i32 = arith.constant 0 : i32
    %c0_i32_0 = arith.constant 0 : i32
    %c0_i32_1 = arith.constant 0 : i32
    return %arg1, %c0_i32, %c0_i32_0 : i32, i32, i32
  }
  func.func @transform_3(%arg0: i32, %arg1: i32) -> (i32, i32, i32) {
    %c0_i32 = arith.constant 0 : i32
    %c0_i32_0 = arith.constant 0 : i32
    %c0_i32_1 = arith.constant 0 : i32
    return %arg1, %c0_i32, %c0_i32_0 : i32, i32, i32
  }
  func.func @transform_4(%arg0: i32, %arg1: i32) -> (i32, i32, i32) {
    %c0_i32 = arith.constant 0 : i32
    %c0_i32_0 = arith.constant 0 : i32
    %c0_i32_1 = arith.constant 0 : i32
    return %arg1, %c0_i32, %c0_i32_0 : i32, i32, i32
  }
  func.func @transform_5(%arg0: i32, %arg1: i32) -> (i32, i32, i32) {
    %c0_i32 = arith.constant 0 : i32
    %c0_i32_0 = arith.constant 0 : i32
    %c0_i32_1 = arith.constant 0 : i32
    return %arg1, %c0_i32, %c0_i32_0 : i32, i32, i32
  }
  func.func @transform_6(%arg0: i32, %arg1: i32) -> (i32, i32, i32) {
    %c0_i32 = arith.constant 0 : i32
    %c0_i32_0 = arith.constant 0 : i32
    %c0_i32_1 = arith.constant 0 : i32
    return %arg1, %c0_i32, %c0_i32_0 : i32, i32, i32
  }
  func.func @transform_7(%arg0: i32, %arg1: i32) -> (i32, i32, i32) {
    %c0_i32 = arith.constant 0 : i32
    %c0_i32_0 = arith.constant 0 : i32
    %c0_i32_1 = arith.constant 0 : i32
    return %arg1, %c0_i32, %c0_i32_0 : i32, i32, i32
  }
  func.func @transform_8(%arg0: i32, %arg1: i32) -> (i32, i32, i32) {
    %c0_i32 = arith.constant 0 : i32
    %c0_i32_0 = arith.constant 0 : i32
    %c0_i32_1 = arith.constant 0 : i32
    return %arg1, %c0_i32, %c0_i32_0 : i32, i32, i32
  }
  func.func @transform_9(%arg0: i32, %arg1: i32) -> (i32, i32, i32) {
    %c0_i32 = arith.constant 0 : i32
    %c0_i32_0 = arith.constant 0 : i32
    %c0_i32_1 = arith.constant 0 : i32
    return %arg1, %c0_i32, %c0_i32_0 : i32, i32, i32
  }
  func.func @transform_10(%arg0: i32, %arg1: i32) -> (i32, i32) {
    %c0_i32 = arith.constant 0 : i32
    %c0_i32_0 = arith.constant 0 : i32
    %c0_i32_1 = arith.constant 0 : i32
    return %c0_i32, %c0_i32_0 : i32, i32
  }
  func.func @transform_11(%arg0: i32, %arg1: i32) -> (i32, i32) {
    %c0_i32 = arith.constant 0 : i32
    %c0_i32_0 = arith.constant 0 : i32
    %c0_i32_1 = arith.constant 0 : i32
    return %c0_i32, %c0_i32_0 : i32, i32
  }
  func.func @transform_12(%arg0: i32, %arg1: i32) -> (i32, i32, i32) {
    %c0_i32 = arith.constant 0 : i32
    %c0_i32_0 = arith.constant 0 : i32
    %c0_i32_1 = arith.constant 0 : i32
    return %arg0, %c0_i32, %c0_i32_0 : i32, i32, i32
  }
}

</mosaic_0001>

<bundles_post_ra>
// kernel: tpu_custom_call.1
= control target key start
LH: loop header
LB: loop body
LE: loop exit
PB: predicated region body
PF: predicated region fallthrough
CT: control target
= control target key end

     0   :  { %s3895_s0 = inlined_call_operand.hbm [shape: f32[2,8,32], index: 0, kind: input, shape index: {}]   ;;  %s3896_s1 = inlined_call_operand.vmem [shape: bf16[2,32,32], index: 1, kind: input, shape index: {}]   ;;  %s3897_s2 = inlined_call_operand.vmem [shape: bf16[2,32,32], index: 2, kind: input, shape index: {}]   ;;  %s3898_s3 = inlined_call_operand.vmem [shape: bf16[2,32,32], index: 3, kind: input, shape index: {}]   ;;  %s3899_s4 = inlined_call_operand.vmem [shape: bf16[2,32,32], index: 4, kind: input, shape index: {}]   ;;  %s3900_s5 = inlined_call_operand.hbm [shape: bf16[2,32,96], index: 5, kind: input, shape index: {}]   ;;  %s3901_s6 = inlined_call_operand.vmem [shape: bf16[2,96,32], index: 6, kind: input, shape index: {}]   ;;  %s3902_s7 = inlined_call_operand.hbm [shape: bf16[2,32,96], index: 7, kind: input, shape index: {}]   ;;  %s3903_s8 = inlined_call_operand.vmem [shape: f32[2,1,32], index: 8, kind: input, shape index: {}]   ;;  %s3904_s9 = inlined_call_operand.vmem [shape: f32[2,1,32], index: 9, kind: input, shape index: {}]   ;;  %s3905_s10 = inlined_call_operand.vmem [shape: f32[8,8], index: 10, kind: input, shape index: {}]   ;;  %s3906_s11 = inlined_call_operand.vmem [shape: f32[8,8], index: 11, kind: input, shape index: {}]   ;;  %s3907_s12 = inlined_call_operand.hbm [shape: f32[2,8,32], index: 12, kind: output, shape index: {}]  }
   0x1   :  { %3930 = sst [smem:[#allocation27_spill]] %s3895_s0 }
   0x2   :  { %3931 = sst [smem:[#allocation28_spill]] %s3896_s1 }
   0x3   :  { %3932 = sst [smem:[#allocation29_spill]] %s3897_s2 }
   0x4   :  { %3933 = sst [smem:[#allocation30_spill]] %s3898_s3 }
   0x5   :  { %3934 = sst [smem:[#allocation31_spill]] %s3899_s4 }
   0x6   :  { %3935 = sst [smem:[#allocation32_spill]] %s3900_s5 }
   0x7   :  { %3936 = sst [smem:[#allocation33_spill]] %s3901_s6 }
   0x8   :  { %3937 = sst [smem:[#allocation34_spill]] %s3902_s7 }
   0x9   :  { %3938 = sst [smem:[#allocation35_spill]] %s3903_s8 }
   0xa   :  { %3939 = sst [smem:[#allocation36_spill]] %s3904_s9 }
   0xb   :  { %3940 = sst [smem:[#allocation37_spill]] %s3905_s10 }
   0xc   :  { %3941 = sst [smem:[#allocation38_spill]] %s3906_s11 }
   0xd   :  { %3942 = sst [smem:[#allocation39_spill]] %s3907_s12 }
   0xe   :  { %17 = vsyncpa [#allocation4], 0 }
   0xf   :  { %19 = vsyncpa [#allocation4 + $0x1], 0 }
  0x10   :  { %20 = vsyncpa [#allocation7], 0 }
  0x11   :  { %22 = vsyncpa [#allocation7 + $0x1], 0 }
  0x12   :  { %23 = vsyncpa [#allocation5], 0 }
  0x13   :  { %25 = vsyncpa [#allocation5 + $0x1], 0  ;;  %s3211_s21 = smov 0   ;;  %s3213_s22 = smov 0  }
  0x14   :  { %s3215_s23 = smov 0   ;;  %s3217_s24 = smov 0  }
  0x15   :  { %s3219_s25 = smov 0   ;;  %s3221_s26 = smov 0  }
  0x16   :  { %s3223_s27 = smov 0   ;;  %s3225_s28 = smov 0  }
  0x17   :  { %s3227_s29 = smov 0   ;;  %s3229_s30 = smov 0  }
  0x18   :  { %s3231_s13 = smov 0  }
  0x19 LB: > { %3943 = sst [smem:[#allocation13_spill]] %s3090_s22  ;;  %s40_s14 = sadd.s32 1, %s3118_s29  ;;  %s3126_s13 = sphi %s3231_s13, %s31_s13   ;;  %s3122_s30 = sphi %s3229_s30, %s4008_s30   ;;  %s3118_s29 = sphi %s3227_s29, %s4007_s29   ;;  %s3114_s28 = sphi %s3225_s28, %s4006_s28   ;;  %s3110_s27 = sphi %s3223_s27, %s4005_s27   ;;  %s3106_s26 = sphi %s3221_s26, %s4004_s26   ;;  %s3102_s25 = sphi %s3219_s25, %s4003_s25   ;;  %s3098_s24 = sphi %s3217_s24, %s4002_s24   ;;  %s3094_s23 = sphi %s3215_s23, %s4001_s23   ;;  %s3090_s22 = sphi %s3213_s22, %s4000_s22   ;;  %s3086_s21 = sphi %s3211_s21, %s3999_s21  }
  0x1a   : > { %3944 = sst [smem:[#allocation14_spill]] %s3094_s23  ;;  %p3913_p0 = scmp.eq.s32.totalorder %s3126_s13, 0 }
  0x1b   : > { %3945 = sst [smem:[#allocation15_spill]] %s3098_s24  ;;  %p3268_p1 = scmp.ge.s32.totalorder %s40_s14, 2 }
  0x1c   : > { %3946 = sst [smem:[#allocation16_spill]] %s3102_s25  ;;  %s180_s16 = sadd.s32 1, %s3094_s23 }
  0x1d   : > { %3947 = sst [smem:[#allocation17_spill]] %s3106_s26  ;;  %p187_p2 = scmp.ne.s32.totalorder %s3094_s23, %s3090_s22 }
  0x1e   : > { %3948 = sst [smem:[#allocation18_spill]] %s3114_s28  ;;  %s4010_s14 = smov (%p3268_p1, %s40_s14), 0 }
  0x1f   : > { %3949 = sst [smem:[#allocation19_spill]] %s3118_s29  ;;  %p189_p3 = por %p187_p2, %p3913_p0 }
  0x20   : > { %3950 = sst [smem:[#allocation20_spill]] %s3122_s30  ;;  %s177_s17 = ssub.s32 %s3118_s29, %s4010_s14 }
  0x21   : > { %3951 = sst [smem:[#allocation21_spill]] %s3126_s13  ;;  %p3912_p4 = scmp.lt.s32.totalorder %s3126_s13, 4 }
  0x22   : > { %3953 = sst [smem:[#allocation22_spill]] %s4010_s14  ;;  %p178_p5 = scmp.eq.s32.totalorder %s177_s17, 0 }
  0x23   : > { %s445_s18 = sand.u32 1, %s3126_s13   ;;  %s447_s19 = sand.u32 1, %s3094_s23  }
  0x24   : > { %s3287_s20 = scalar_select %p178_p5, %s3094_s23, %s180_s16  }
  0x25   : > { %s3289_s12 = sshll.u32 %s447_s19, 4  ;;  %s3910_s28 = sshll.u32 %s3118_s29, 8 }
  0x26   : > { %3954 = sst [smem:[#allocation23_spill]] %s3287_s20  ;;  %s3955_s5 = sld [smem:[#allocation32_spill]] }
  0x27   : > { %s449_s14 = scalar_lea.vmem [#allocation6], %s3289_s12  ;;  %p3302_p6 = pnand %p3912_p4, %p189_p3 }
  0x28   : > { %s456_s17 = sshll.u32 %s449_s14, 4  ;;  %s3308_s19 = scalar_lea.sflag [#allocation7], %s445_s18  ;;  %s3306_s17 = int_to_ptr.vmem [resolvable:$true] %s456_s17 }
  0x29   : > { %p3914_p8 = pneg %p3302_p6 }
  0x2c   : > { %s3297_s9 = scalar_lea.hbm %s3955_s5, %s3910_s28  ;;  %s2915_s28 = scalar_lea.hbm %s3955_s5, 512 }
  0x2d   : > { %s2910_s10 = scalar_lea.hbm %s3297_s9, 256  ;;  %p2916_p11 = scmp.lt.u32.totalorder %s3297_s9, %s3955_s5 }
  0x2e   : > { %p2911_p7 = scmp.ne.s32.totalorder %s3297_s9, %s2910_s10  ;;  %p2917_p12 = scmp.lt.u32.totalorder %s2915_s28, %s2910_s10 }
  0x2f   : > { %p2919_p2 = scmp.lt.u32.totalorder %s2910_s10, %s3297_s9 }
  0x30   : > { %p2913_p9 = pnand %p3914_p8, %p2911_p7  ;;  %p2918_p13 = por %p2917_p12, %p2916_p11 }
  0x32   : > { %p2914_p10 = pneg %p2913_p9  ;;  %p2920_p3 = por %p2919_p2, %p2918_p13 }
  0x34   : > { %p2921_p5 = pnand %p2920_p3, %p2914_p10 }
  0x36   : > { %2924 = shalt.err (!%p2921_p5)
}
  0x37   : > { %s2925_s18 = scalar_lea.vmem %s3306_s17, 256  ;;  %s3128_s11 = smov [#allocation6]  }
  0x38   : > { %p2926_p7 = scmp.ne.s32.totalorder %s3306_s17, %s2925_s18  ;;  %s2930_s14 = sshll.u32 %s3128_s11, 4  ;;  %s2931_s14 = int_to_ptr.vmem [resolvable:$false] %s2930_s14 }
  0x39   : > { %s2932_s23 = scalar_lea.vmem %s2931_s14, 512  ;;  %p2933_p0 = scmp.lt.s32.totalorder %s3306_s17, %s2931_s14 }
  0x3a   : > { %p2928_p9 = pnand %p2926_p7, %p3914_p8  ;;  %p2934_p11 = scmp.lt.s32.totalorder %s2932_s23, %s2925_s18 }
  0x3c   : > { %p2929_p4 = pneg %p2928_p9  ;;  %p2935_p12 = por %p2934_p11, %p2933_p0 }
  0x3e   : > { %p2936_p13 = pnand %p2935_p12, %p2929_p4 }
  0x40   : > { %2939 = shalt.err (!%p2936_p13)
}
  0x41   : > { %s3915_s28 = smov 64   ;;  %s3916_s20 = smov 4  }
  0x42   : > { %2755 = dma.hbm_to_vmem [thread:$0]  (!%p3302_p6), %s3297_s9, 256, %s3306_s17, %s3308_s19, %s3915_s28, %s3915_s28, %s3916_s20  }
  0x43   : > { %p193_p0 = scmp.ne.s32.totalorder %s3090_s22, %s3086_s21  ;;  %s3957_s10 = sshll.u32 %s3118_s29, 8 }
  0x44   : > { %s3958_s7 = sld [smem:[#allocation34_spill]]  ;;  %p2517_p4 = scmp.ge.s32.totalorder %s3126_s13, 1 }
  0x45   : > { %s478_s23 = scalar_lea.vmem [#allocation8], %s3289_s12  ;;  %p505_p10 = scmp.lt.s32.totalorder %s3126_s13, 5 }
  0x46   : > { %s485_s5 = sshll.u32 %s478_s23, 4  ;;  %s3356_s9 = sadd.s32 4294967295, %s3126_s13   ;;  %s3423_s5 = int_to_ptr.vmem [resolvable:$true] %s485_s5 }
  0x47   : > { %p3351_p2 = pnand %p2517_p4, %p505_p10  ;;  %s2506_s17 = sadd.s32 4294967294, %s3126_s13  }
  0x48   : > { %s50_s12 = sadd.s32 1, %s3106_s26  ;;  %p57_p3 = scmp.ne.s32.totalorder %s3106_s26, %s3102_s25 }
  0x49   : > { %s3959_s8 = scalar_select %p3351_p2, 1, 0 }
  0x4a   : > { %s3346_s14 = scalar_lea.hbm %s3958_s7, %s3957_s10  ;;  %s43_s10 = sadd.s32 1, %s3122_s30 }
  0x4b   : > { %s4012_s10 = smov (!%p3268_p1, %s43_s10), %s3122_s30  ;;  %p63_p7 = scmp.ne.s32.totalorder %s3102_s25, %s3098_s24 }
  0x4c   : > { %p45_p5 = scmp.ge.s32.totalorder %s4012_s10, 2  ;;  %p3960_p9 = scmp.eq.s32.totalorder %s3126_s13, 0 }
  0x4d   : > { %p64_p12 = scmp.eq.s32.totalorder %s3356_s9, 0  ;;  %p363_p4 = scmp.eq.s32.totalorder %s3356_s9, 3 }
  0x4e   : > { %p3370_p11 = por %p3960_p9, %p57_p3  ;;  %s4014_s10 = smov (%p45_p5, %s4012_s10), 0 }
  0x4f   : > { %3962 = sst [smem:[#allocation24_spill]] %s4014_s10  ;;  %p3380_p1 = por %p64_p12, %p63_p7 }
  0x50   : > { %p3387_p13 = por %p193_p0, %p64_p12  ;;  %s47_s23 = ssub.s32 %s3122_s30, %s4014_s10 }
  0x51   : > { %s3963_s15 = scalar_select %p3380_p1, 1, 0 }
  0x52   : > { %s3964_s11 = scalar_select %p3387_p13, 1, 0 }
  0x53   : > { %p48_p10 = scmp.eq.s32.totalorder %s47_s23, 0  ;;  %p369_p9 = scmp.eq.s32.totalorder %s2506_s17, 3 }
  0x54   : > { %p3394_p8 = por %p363_p4, %p57_p3  ;;  %s395_s20 = sand.u32 1, %s3106_s26  }
  0x55   : > { %s3400_s29 = scalar_select %p48_p10, %s3106_s26, %s50_s12  }
  0x56   : > { %s3965_s28 = scalar_select %p3394_p8, 1, 0 }
  0x57   : > { %3966 = sst [smem:[#allocation25_spill]] %s3400_s29  ;;  %p3405_p5 = por %p369_p9, %p63_p7 }
  0x58   : > { %s2509_s21 = sshll.u32 %s395_s20, 3  ;;  %s2510_s4 = sshll.u32 %s3122_s30, 7 }
  0x59   : > { %s3967_s6 = scalar_select %p3405_p5, 1, 0 }
  0x5a   : > { %s3969_s0 = sld [smem:[#allocation27_spill]]  ;;  %s399_s17 = scalar_lea.vmem [#allocation3], %s2509_s21 }
  0x5b   : > { %3968 = sst [smem:[#allocation26_spill]] %s3967_s6  ;;  %s406_s23 = sshll.u32 %s399_s17, 4  ;;  %s3425_s23 = int_to_ptr.vmem [resolvable:$true] %s406_s23 }
  0x5c   : > { %p3970_p0 = scmp.lt.s32.totalorder %s3126_s13, 4  ;;  %s396_s2 = scalar_lea.sflag [#allocation4], %s395_s20 }
  0x5e   : > { %p3419_p3 = pnand %p3970_p0, %p3370_p11 }
  0x60   : > { %s3413_s10 = scalar_lea.hbm %s3969_s0, %s2510_s4  ;;  %p2942_p12 = pneg %p3419_p3 }
  0x61   : > { %s2940_s3 = scalar_lea.hbm %s3413_s10, 128  ;;  %s2945_s21 = scalar_lea.hbm %s3969_s0, 256 }
  0x62   : > { %p2941_p7 = scmp.ne.s32.totalorder %s3413_s10, %s2940_s3  ;;  %p2946_p11 = scmp.lt.u32.totalorder %s3413_s10, %s3969_s0 }
  0x63   : > { %p2947_p9 = scmp.lt.u32.totalorder %s2945_s21, %s2940_s3  ;;  %p2949_p5 = scmp.lt.u32.totalorder %s2940_s3, %s3413_s10 }
  0x64   : > { %p2943_p4 = pnand %p2942_p12, %p2941_p7 }
  0x65   : > { %p2948_p0 = por %p2947_p9, %p2946_p11 }
  0x66   : > { %p2944_p10 = pneg %p2943_p4 }
  0x67   : > { %p2950_p8 = por %p2949_p5, %p2948_p0 }
  0x69   : > { %p2951_p13 = pnand %p2950_p8, %p2944_p10 }
  0x6b   : > { %2954 = shalt.err (!%p2951_p13)
}
  0x6c   : > { %s2955_s20 = scalar_lea.vmem %s3425_s23, 128  ;;  %s3131_s4 = smov [#allocation3]  }
  0x6d   : > { %p2956_p7 = scmp.ne.s32.totalorder %s3425_s23, %s2955_s20  ;;  %s2960_s18 = sshll.u32 %s3131_s4, 4  ;;  %s2961_s18 = int_to_ptr.vmem [resolvable:$false] %s2960_s18 }
  0x6e   : > { %s2962_s30 = scalar_lea.vmem %s2961_s18, 256  ;;  %p2963_p2 = scmp.lt.s32.totalorder %s3425_s23, %s2961_s18 }
  0x6f   : > { %p2958_p4 = pnand %p2956_p7, %p2942_p12  ;;  %p2964_p11 = scmp.lt.s32.totalorder %s2962_s30, %s2955_s20 }
  0x71   : > { %p2959_p1 = pneg %p2958_p4  ;;  %p2965_p9 = por %p2964_p11, %p2963_p2 }
  0x73   : > { %p2966_p5 = pnand %p2965_p9, %p2959_p1 }
  0x75   : > { %2969 = shalt.err (!%p2966_p5)
}
  0x76   : > { %2752 = dma.hbm_to_vmem [thread:$0]  (!%p3419_p3), %s3413_s10, 128, %s3425_s23, %s396_s2  }
  0x77   : > { %s2970_s3 = scalar_lea.hbm %s3346_s14, 256  ;;  %p3972_p13 = pneg %p3302_p6 }
  0x78   : > { %p2971_p8 = scmp.ne.s32.totalorder %s3346_s14, %s2970_s3  ;;  %s2975_s20 = scalar_lea.hbm %s3958_s7, 512 }
  0x79   : > { %p2976_p2 = scmp.lt.u32.totalorder %s3346_s14, %s3958_s7  ;;  %p2977_p1 = scmp.lt.u32.totalorder %s2975_s20, %s2970_s3 }
  0x7a   : > { %p2973_p12 = pnand %p2971_p8, %p3972_p13  ;;  %p2979_p7 = scmp.lt.u32.totalorder %s2970_s3, %s3346_s14 }
  0x7b   : > { %p2978_p0 = por %p2977_p1, %p2976_p2 }
  0x7c   : > { %p2974_p10 = pneg %p2973_p12 }
  0x7d   : > { %p2980_p4 = por %p2979_p7, %p2978_p0 }
  0x7f   : > { %p2981_p11 = pnand %p2980_p4, %p2974_p10 }
  0x81   : > { %2984 = shalt.err (!%p2981_p11)
}
  0x82   : > { %s2985_s10 = scalar_lea.vmem %s3423_s5, 256  ;;  %p3973_p9 = pmov %p3972_p13 }
  0x83   : > { %p2986_p3 = scmp.ne.s32.totalorder %s3423_s5, %s2985_s10  ;;  %s3132_s23 = smov [#allocation8]  }
  0x84   : > { %s2990_s2 = sshll.u32 %s3132_s23, 4  ;;  %s2991_s2 = int_to_ptr.vmem [resolvable:$false] %s2990_s2 }
  0x85   : > { %p2988_p5 = pnand %p2986_p3, %p3973_p9  ;;  %s2992_s18 = scalar_lea.vmem %s2991_s2, 512 }
  0x86   : > { %p2993_p13 = scmp.lt.s32.totalorder %s3423_s5, %s2991_s2  ;;  %p2994_p12 = scmp.lt.s32.totalorder %s2992_s18, %s2985_s10 }
  0x87   : > { %p2989_p8 = pneg %p2988_p5 }
  0x88   : > { %p2995_p2 = por %p2994_p12, %p2993_p13 }
  0x8a   : > { %p2996_p1 = pnand %p2995_p2, %p2989_p8 }
  0x8c   : > { %2999 = shalt.err (!%p2996_p1)
}
  0x8d   : > { %s3974_s30 = smov 4   ;;  %s3975_s3 = smov 64  }
  0x8e   : > { %2758 = dma.hbm_to_vmem [thread:$0]  (!%p3302_p6), %s3346_s14, 256, %s3423_s5, %s3308_s19, %s3975_s3, %s3975_s3, %s3974_s30  }
  0x8f   : > { %p3976_p10 = scmp.ne.s32.totalorder %s3959_s8, 0 }
  0x90   : > { %s3482_s21 = sand.u32 (!%p3976_p10), 1, %s3102_s25   ;;  %p3977_p0 = scmp.ne.s32.totalorder (!%p3976_p10), %s3963_s15, 0 }
  0x91   : > { %509 = sbr.rel (%p3976_p10) target bundleno = 2664 (0xa68), region = 68  ;;  %s2518_s17 = sshll.u32 (!%p3976_p10), %s3482_s21, 3 }
  0x92   : > { %s512_s20 = scalar_lea.sflag (!%p3976_p10), [#allocation4], %s3482_s21  ;;  %s515_s4 = scalar_lea.vmem (!%p3976_p10), [#allocation3], %s2518_s17 }
  0x98   : > { %3073 = dma.done.wait (%p3977_p0), %s512_s20, 128  }
  0x99   : > { %3075 = vsyncadd (%p3977_p0), %s512_s20, 4294967168  ;;  %s520_s5 = sand.u32 1, %s3356_s9   ;;  %s522_s8 = sand.u32 1, %s3090_s22  }
  0x9a   : > { %s3492_s16 = sshll.u32 %s522_s8, 4  ;;  %s521_s19 = scalar_lea.sflag [#allocation7], %s520_s5 }
  0x9b   : > { %p3978_p6 = scmp.ne.s32.totalorder %s3964_s11, 0 }
  0x9d   : > { %3077 = dma.done.wait (%p3978_p6), %s521_s19, 512  }
  0x9e   : > { %3079 = vsyncadd (%p3978_p6), %s521_s19, 4294966784  ;;  %p615_p7 = scmp.lt.s32.totalorder %s3110_s27, 1  ;;  %s3979_s1 = sld [smem:[#allocation28_spill]] }
  0x9f   : > { %s3980_s11 = sld [smem:[#allocation29_spill]]  ;;  %s3981_s8 = sld [smem:[#allocation30_spill]] }
  0xa0   : > { %s3501_s15 = scalar_select %p615_p7, %s3110_s27, 1 }
  0xa1   : > { %s3982_s7 = sld [smem:[#allocation31_spill]]  ;;  %s3983_s22 = sld [smem:[#allocation33_spill]] }
  0xa2   : > { %s2583_s9 = sshll.u32 %s3501_s15, 4  ;;  %s2740_s12 = smul.u32 48, %s3501_s15 }
  0xa3   : > { %s3985_s24 = sld [smem:[#allocation36_spill]]  ;;  %s533_s20 = scalar_lea.vmem [#allocation8], %s3492_s16 }
  0xa4   : > { %s619_s2 = scalar_lea.vmem %s3979_s1, %s2583_s9  ;;  %s3984_s1 = sld [smem:[#allocation35_spill]] }
  0xa5   : > { %s3511_s3 = scalar_lea.vmem %s3980_s11, %s2583_s9  ;;  %s629_s19 = scalar_lea.vmem %s3981_s8, %s2583_s9 }
  0xa6   : > { %s3535_s5 = scalar_lea.vmem [#allocation9], %s2518_s17  ;;  %p2531_p4 = scmp.ne.s32.totalorder %s3110_s27, 0 }
  0xa7   : > { %s3519_s29 = scalar_lea.vmem %s3982_s7, %s2583_s9  ;;  %s3524_s6 = scalar_lea.vmem %s3983_s22, %s2740_s12  ;;  %v651_v0 = vld [vmem:[%s515_s4] sm:$0xff] (!%p2531_p4)  ;;  %vm652_vm0 = vcmask (!%p2531_p4), 261120  }
  0xa8   : > { %650 = sbr.rel (%p2531_p4) target bundleno = 175 (0xaf), region = 84  ;;  %653 = vst.msk [vmem:[#allocation2] sm:$0xff] (!%p2531_p4), %vm652_vm0, %v651_v0 }
  0xa9   : > { %s645_s13 = scalar_lea.vmem %s3985_s24, %s3501_s15 }
  0xaa   : > { %s642_s18 = scalar_lea.vmem %s3984_s1, %s3501_s15 }
  0xaf PF: > { %v654_v1 = vld [vmem:[#allocation2] sm:$0xff]  ;;  %vm656_vm1 = vcmask 261120   ;;  %v3133_v6 = vmov 0.0   ;;  %v2869_v7 = vld [vmem:[%s619_s2 + $0x8] sm:$0xff]   ;;  %vm3134_vm2 = vmmov 0   ;;  %s3135_s22 = smov 120   ;;  %v860_v34 = vlaneseq }
  0xb0   : > { %v655_v2 = vmul.f32 %v654_v1, %v654_v1  ;;  %v2867_v4 = vld [vmem:[%s619_s2] sm:$0xff]   ;;  %2628 = vmatprep.subr.bf16.mxu1 %v3133_v6  ;;  %2644 = vmatprep.subr.bf16.mxu0 %v3133_v6  ;;  %v2870_v8 = vld [vmem:[%s629_s19 + $0x8] sm:$0xff]   ;;  %s3136_s24 = smov 112   ;;  %s3137_s25 = smov 104   ;;  %v3138_v32 = vmov 1983009808  }
  0xb1   : > { %v2868_v5 = vld [vmem:[%s629_s19] sm:$0xff]   ;;  %2629 = vmatpush3.bf16.msra.mxu1 %v2867_v4  ;;  %2632 = vmatprep.mubr.msk.bf16.mxu1 %vm3134_vm2, %v3133_v6  ;;  %v2872_v18 = vld [vmem:[%s3511_s3 + $0x8] sm:$0xff]   ;;  %v858_v33 = vunpack.c.l.s4 %v3138_v32  ;;  %v3576_v37 = vshrl.u32 %v860_v34, 7  ;;  %v3139_v39 = vmov 1934713408   ;;  %s3140_s26 = smov 4  }
  0xb2   : > { %v657_v3 = vsel %vm656_vm1, %v655_v2, 0.0  ;;  %2645 = vmatpush3.bf16.msra.mxu0 %v2868_v5  ;;  %2630 = vmatprep.subr.bf16.mxu1 %v3133_v6  ;;  %v2532_v13 = vld [vmem:[%s642_s18] ss:$0 sm:$0xff]  ;;  %v890_v40 = vunpack.c.l.s4 %v3139_v39  ;;  %s3141_s17 = smov 124   ;;  %s3987_s9 = sld [smem:[#allocation37_spill]]  ;;  %vm1321_vm3 = vcmask 31744  }
  0xb3   : > { %658 = vadd.xlane.f32.xlu0 %v657_v3  ;;  %2646 = vmatprep.subr.bf16.mxu0 %v3133_v6  ;;  %v2871_v16 = vld [vmem:[%s3511_s3] sm:$0xff]   ;;  %v859_v36 = vunpack.c.0.s8 %v858_v33  ;;  %s3988_s3 = sld [smem:[#allocation38_spill]]  ;;  %vm1404_vm4 = vcmask 64512   ;;  %vm1652_vm6 = vcmask 1043456   ;;  %s3143_s8 = smov 8   ;;  %vm1983_vm7 = vcmask 130048  }
  0xb4   : > { %2648 = vmatprep.mubr.msk.bf16.mxu0 %vm3134_vm2, %v3133_v6  ;;  %v891_v47 = vunpack.c.0.s8 %v890_v40  ;;  %s3144_s19 = smov 24   ;;  %vm1985_vm8 = vcmask 195584   ;;  %s3989_s10 = scalar_lea.vmem [#allocation6], %s3492_s16  ;;  %vm2237_vm9 = vcmask 785408  }
  0xb5   : > { %2631 = vmatpush3.bf16.msra.mxu1 %v2869_v7  ;;  %v3579_v44 = vsub.s32 %v859_v36, %v3576_v37  ;;  %s3990_s23 = smov %s3989_s10  ;;  %p2576_p11 = scmp.ne.s32.totalorder %s3110_s27, 1 }
  0xb6   : > { %2647 = vmatpush3.bf16.msra.mxu0 %v2870_v8  ;;  %2636 = vmatprep.subr.bf16.mxu1 %v3133_v6  ;;  %v3586_v53 = vsub.s32 %v891_v47, %v3576_v37 }
  0xb7   : > { %2658 = vmatprep.subr.bf16.mxu0 %v3133_v6 }
 0x140   : > { %v659_v9 = vpop.xlane.xlu0 %658 }
 0x141   : > { %v661_v10 = vmul.f32 0.03125, %v659_v9 }
 0x143   : > { %v662_v11 = vadd.f32 1e-06, %v661_v10 }
 0x145   : > { %2885 = vrsqrt.f32 %v662_v11 }
 0x14f   : > { %v2886_v12 = vpop.eup %2885 }
 0x150   : > { %v664_v14 = vmul.f32 %v2886_v12, %v654_v1 }
 0x152   : > { %v672_v15 = vmul.f32 %v2532_v13, %v664_v14 }
 0x154   : > { %v673_v17 = vpack.c.bf16 %v672_v15, %v672_v15 }
 0x156   : > { %2633 = vmatmul.mubr.msk.bf16.vlgmr.msra.gmra.mrb[0].mxu1 %vm656_vm1, %v673_v17  ;;  %2649 = vmatmul.mubr.msk.bf16.vlgmr.msra.gmra.mrb[0].mxu0 %vm656_vm1, %v673_v17 }
 0x157   : > { %2637 = vmatpush3.bf16.msra.mxu1 %v2871_v16  ;;  %2640 = vmatprep.mubr.msk.bf16.mxu1 %vm3134_vm2, %v3133_v6 }
 0x158   : > { %2638 = vmatprep.subr.bf16.mxu1 %v3133_v6  ;;  %2660 = vmatprep.mubr.msk.bf16.mxu0 %vm3134_vm2, %v3133_v6 }
 0x15b   : > { %2639 = vmatpush3.bf16.msra.mxu1 %v2872_v18 }
 0x15c   : > { %2652 = vmatprep.subr.bf16.mxu1 %v3133_v6 }
 0x15e   : > { %2641 = vmatmul.mubr.msk.bf16.vlgmr.msra.gmra.mrb[4].mxu1 %vm656_vm1, %v673_v17 }
 0x15f   : > { %2654 = vmatprep.mubr.msk.bf16.mxu1 %vm3134_vm2, %v3133_v6 }
 0x229   : > { %v727_v19 = vpop.f32.mrb[0].mxu1  ;;  %v3567_v20 = vpop.f32.mrb[0].mxu0 }
 0x22a   : > { %v2650_v21 = vpop.f32.mrb[1].mxu0  ;;  %846 = vrot.lane.b32.xlu1 %v727_v19, %s3135_s22  ;;  %v2634_v22 = vpop.f32.mrb[1].mxu1 }
 0x22b   : > { %v730_v23 = vpop.f32.mrb[2].mxu1  ;;  %v842_v24 = vpop.f32.mrb[2].mxu0 }
 0x22c   : > { %v2635_v25 = vpop.f32.mrb[3].mxu1  ;;  %v2651_v26 = vpop.f32.mrb[3].mxu0 }
 0x231   : > { %v783_v27 = vpop.f32.mrb[4].mxu1 }
 0x232   : > { %995 = vrot.lane.b32.xlu1 %v783_v27, %s3136_s24  ;;  %992 = vrot.lane.b32.xlu0 %v783_v27, %s3135_s22  ;;  %v2642_v28 = vpop.f32.mrb[5].mxu1 }
 0x233   : > { %v786_v29 = vpop.f32.mrb[6].mxu1 }
 0x234   : > { %v2643_v30 = vpop.f32.mrb[7].mxu1 }
 0x236   : > { %998 = vrot.lane.b32.xlu1 %v783_v27, %s3137_s25 }
 0x23a   : > { %849 = vrot.lane.b32.xlu1 %v727_v19, %s3136_s24 }
 0x23e   : > { %852 = vrot.lane.b32.xlu1 %v727_v19, %s3137_s25 }
 0x29c   : > { %v847_v31 = vpop.permute.xlu1 %846 }
 0x2a4   : > { %v996_v35 = vpop.permute.xlu1 %995  ;;  %v993_v38 = vpop.permute.xlu0 %992 }
 0x2a5   : > { %v1001_v45 = vcombine.low %v783_v27, %v996_v35  ;;  %v1002_v46 = vcombine.high %v783_v27, %v996_v35 }
 0x2a7   : > { %v1009_v51 = vrot.slane %v1001_v45, %v3579_v44  ;;  %v1016_v52 = vrot.slane %v1002_v46, %v3579_v44 }
 0x2a8   : > { %v999_v41 = vpop.permute.xlu1 %998 }
 0x2a9   : > { %v1017_v42 = vcombine.low %v993_v38, %v999_v41  ;;  %v1018_v43 = vcombine.high %v993_v38, %v999_v41 }
 0x2ab   : > { %v1025_v49 = vrot.slane %v1017_v42, %v3579_v44  ;;  %v1032_v50 = vrot.slane %v1018_v43, %v3579_v44 }
 0x2ac   : > { %v850_v48 = vpop.permute.xlu1 %849 }
 0x2ad   : > { %v855_v54 = vcombine.low %v727_v19, %v850_v48  ;;  %v856_v55 = vcombine.high %v727_v19, %v850_v48  ;;  %v1033_v57 = vcombine.low %v1009_v51, %v1025_v49  ;;  %v1034_v58 = vcombine.high %v1009_v51, %v1025_v49 }
 0x2ae   : > { %v1049_v59 = vcombine.low %v1016_v52, %v1032_v50  ;;  %v1050_v60 = vcombine.high %v1016_v52, %v1032_v50 }
 0x2af   : > { %v863_v63 = vrot.slane %v855_v54, %v3579_v44  ;;  %v870_v0 = vrot.slane %v856_v55, %v3579_v44  ;;  %v1041_v3 = vrot.slane %v1033_v57, %v3586_v53  ;;  %v1048_v4 = vrot.slane %v1034_v58, %v3586_v53 }
 0x2b0   : > { %v853_v56 = vpop.permute.xlu1 %852  ;;  %v1057_v5 = vrot.slane %v1049_v59, %v3586_v53  ;;  %v1064_v7 = vrot.slane %v1050_v60, %v3586_v53 }
 0x2b1   : > { %v871_v61 = vcombine.low %v847_v31, %v853_v56  ;;  %v872_v62 = vcombine.high %v847_v31, %v853_v56  ;;  %v1069_v16 = vcombine.low %v1041_v3, %v1048_v4  ;;  %v2544_v17 = vcombine.high %v1041_v3, %v1048_v4 }
 0x2b2   : > { %v1085_v18 = vcombine.low %v1057_v5, %v1064_v7  ;;  %v2545_v19 = vcombine.high %v1057_v5, %v1064_v7 }
 0x2b3   : > { %v879_v1 = vrot.slane %v871_v61, %v3579_v44  ;;  %v886_v2 = vrot.slane %v872_v62, %v3579_v44  ;;  %v1076_v29 = vrot.slane %v1069_v16, %v3579_v44  ;;  %v1084_v30 = vrot.slane %v2544_v17, %v3579_v44 }
 0x2b4   : > { %v1092_v33 = vrot.slane %v1085_v18, %v3579_v44  ;;  %v1100_v35 = vrot.slane %v2545_v19, %v3579_v44 }
 0x2b5   : > { %v887_v8 = vcombine.low %v863_v63, %v879_v1  ;;  %v888_v9 = vcombine.high %v863_v63, %v879_v1  ;;  %v903_v10 = vcombine.low %v870_v0, %v886_v2  ;;  %v904_v11 = vcombine.high %v870_v0, %v886_v2 }
 0x2b6   : > { %v1101_v41 = vcombine.low %v1076_v29, %v1084_v30  ;;  %v1117_v42 = vcombine.low %v1092_v33, %v1100_v35  ;;  %v1102_v43 = vcombine.high %v1076_v29, %v1084_v30  ;;  %v1118_v45 = vcombine.high %v1092_v33, %v1100_v35 }
 0x2b7   : > { %v895_v12 = vrot.slane %v887_v8, %v3586_v53  ;;  %v902_v13 = vrot.slane %v888_v9, %v3586_v53  ;;  %v911_v14 = vrot.slane %v903_v10, %v3586_v53  ;;  %v918_v15 = vrot.slane %v904_v11, %v3586_v53 }
 0x2b8   : > { %v1109_v48 = vrot.slane %v1101_v41, %v3586_v53  ;;  %v1125_v49 = vrot.slane %v1117_v42, %v3586_v53  ;;  %v1116_v50 = vrot.slane %v1102_v43, %v3586_v53  ;;  %v1132_v51 = vrot.slane %v1118_v45, %v3586_v53 }
 0x2b9   : > { %v923_v21 = vcombine.low %v895_v12, %v902_v13  ;;  %v2542_v22 = vcombine.high %v895_v12, %v902_v13  ;;  %v939_v23 = vcombine.low %v911_v14, %v918_v15  ;;  %v2543_v24 = vcombine.high %v911_v14, %v918_v15  ;;  %v3651_v12 = vld [vmem:[%s3987_s9] sm:$0xff] }
 0x2ba   : > { %v1134_v55 = vcombine.high %v1109_v48, %v1125_v49  ;;  %v1133_v56 = vcombine.low %v1109_v48, %v1125_v49  ;;  %v1135_v57 = vcombine.low %v1116_v50, %v1132_v51  ;;  %v1136_v1 = vcombine.high %v1116_v50, %v1132_v51  ;;  %v1284_v15 = vld [vmem:[%s3988_s3] sm:$0xff] }
 0x2bb   : > { %v930_v25 = vrot.slane %v923_v21, %v3579_v44  ;;  %v938_v26 = vrot.slane %v2542_v22, %v3579_v44  ;;  %v946_v27 = vrot.slane %v939_v23, %v3579_v44  ;;  %v954_v28 = vrot.slane %v2543_v24, %v3579_v44 }
 0x2bc   : > { %v1338_v58 = vsub.f32 0.0, %v1133_v56  ;;  %v1340_v61 = vsub.f32 0.0, %v1135_v57  ;;  %v1339_v62 = vsub.f32 0.0, %v1134_v55  ;;  %v1341_v2 = vsub.f32 0.0, %v1136_v1 }
 0x2bd   : > { %v955_v31 = vcombine.low %v930_v25, %v938_v26  ;;  %v971_v32 = vcombine.low %v946_v27, %v954_v28  ;;  %v956_v52 = vcombine.high %v930_v25, %v938_v26  ;;  %v972_v54 = vcombine.high %v946_v27, %v954_v28 }
 0x2be   : > { %v1378_v17 = vmul.f32 %v3651_v12, %v1133_v56  ;;  %v1379_v22 = vmul.f32 %v3651_v12, %v1134_v55  ;;  %v1380_v26 = vmul.f32 %v3651_v12, %v1135_v57  ;;  %v1381_v51 = vmul.f32 %v3651_v12, %v1136_v1 }
 0x2bf   : > { %v963_v36 = vrot.slane %v955_v31, %v3586_v53  ;;  %v979_v38 = vrot.slane %v971_v32, %v3586_v53  ;;  %v970_v59 = vrot.slane %v956_v52, %v3586_v53  ;;  %v986_v60 = vrot.slane %v972_v54, %v3586_v53 }
 0x2c1   : > { %v3610_v39 = vcombine.high %v963_v36, %v979_v38  ;;  %v3612_v40 = vcombine.low %v963_v36, %v979_v38  ;;  %v3632_v63 = vcombine.low %v970_v59, %v986_v60  ;;  %v3639_v3 = vcombine.high %v970_v59, %v986_v60 }
 0x2c3   : > { %1311 = vrot.lane.b32.xlu1 %v3610_v39, %s3140_s26  ;;  %1309 = vrot.lane.b32.xlu0 %v3612_v40, %s3140_s26  ;;  %v1286_v46 = vsub.f32 0.0, %v3610_v39  ;;  %v1285_v47 = vsub.f32 0.0, %v3612_v40  ;;  %v1287_v0 = vsub.f32 0.0, %v3632_v63  ;;  %v1288_v4 = vsub.f32 0.0, %v3639_v3 }
 0x2c4   : > { %v1326_v33 = vmul.f32 %v3651_v12, %v3612_v40 }
 0x2c7   : > { %1295 = vrot.lane.b32.xlu1 %v1286_v46, %s3141_s17  ;;  %1293 = vrot.lane.b32.xlu0 %v1285_v47, %s3141_s17  ;;  %v1327_v47 = vmul.f32 %v3651_v12, %v3610_v39  ;;  %v1328_v39 = vmul.f32 %v3651_v12, %v3632_v63 }
 0x2cb   : > { %1364 = vrot.lane.b32.xlu1 %v1134_v55, %s3140_s26  ;;  %1362 = vrot.lane.b32.xlu0 %v1133_v56, %s3140_s26 }
 0x2cf   : > { %1366 = vrot.lane.b32.xlu0 %v1135_v57, %s3140_s26  ;;  %1346 = vrot.lane.b32.xlu1 %v1338_v58, %s3141_s17 }
 0x2d3   : > { %1350 = vrot.lane.b32.xlu0 %v1340_v61, %s3141_s17  ;;  %1348 = vrot.lane.b32.xlu1 %v1339_v62, %s3141_s17 }
 0x2d7   : > { %1297 = vrot.lane.b32.xlu0 %v1287_v0, %s3141_s17  ;;  %1368 = vrot.lane.b32.xlu1 %v1136_v1, %s3140_s26 }
 0x2db   : > { %1313 = vrot.lane.b32.xlu0 %v3632_v63, %s3140_s26  ;;  %1352 = vrot.lane.b32.xlu1 %v1341_v2, %s3141_s17 }
 0x2df   : > { %1299 = vrot.lane.b32.xlu1 %v1288_v4, %s3141_s17 }
 0x2e3   : > { %1315 = vrot.lane.b32.xlu1 %v3639_v3, %s3140_s26 }
 0x335   : > { %v1312_v5 = vpop.permute.xlu1 %1311  ;;  %v1310_v7 = vpop.permute.xlu0 %1309 }
 0x339   : > { %v1296_v8 = vpop.permute.xlu1 %1295  ;;  %v1294_v9 = vpop.permute.xlu0 %1293 }
 0x33a   : > { %v1322_v19 = vsel %vm1321_vm3, %v1294_v9, %v1310_v7  ;;  %v1323_v32 = vsel %vm1321_vm3, %v1296_v8, %v1312_v5  ;;  %v1329_v7 = vmul.f32 %v3651_v12, %v3639_v3 }
 0x33b   : > { %v1330_v28 = vmul.f32 %v1322_v19, %v1284_v15  ;;  %v1331_v43 = vmul.f32 %v1323_v32, %v1284_v15 }
 0x33d   : > { %v1365_v10 = vpop.permute.xlu1 %1364  ;;  %v1363_v11 = vpop.permute.xlu0 %1362  ;;  %v1334_v45 = vadd.f32 %v1330_v28, %v1326_v33  ;;  %v1335_v55 = vadd.f32 %v1331_v43, %v1327_v47 }
 0x33f   : > { %v1396_v56 = vpack.c.bf16 %v1334_v45, %v1334_v45  ;;  %v1397_v62 = vpack.c.bf16 %v1335_v55, %v1335_v55 }
 0x341   : > { %v1347_v13 = vpop.permute.xlu1 %1346  ;;  %v1367_v14 = vpop.permute.xlu0 %1366 }
 0x342   : > { %v1374_v16 = vsel %vm1321_vm3, %v1347_v13, %v1363_v11  ;;  %v1393_v11 = vand.u32 127, %v860_v34 }
 0x343   : > { %v1382_v18 = vmul.f32 %v1374_v16, %v1284_v15 }
 0x344   : > { %vm1394_vm5 = vcmp.gt.s32.totalorder %v1393_v11, %v3576_v37 }
 0x345   : > { %v1386_v21 = vadd.f32 %v1382_v18, %v1378_v17  ;;  %v1349_v23 = vpop.permute.xlu1 %1348  ;;  %v1351_v24 = vpop.permute.xlu0 %1350  ;;  %v1395_v12 = vsel %vm1394_vm5, -inf, %v3133_v6 }
 0x346   : > { %v1375_v25 = vsel %vm1321_vm3, %v1349_v23, %v1365_v10  ;;  %v1376_v27 = vsel %vm1321_vm3, %v1351_v24, %v1367_v14 }
 0x347   : > { %v1400_v29 = vpack.c.bf16 %v1386_v21, %v1386_v21  ;;  %v1383_v30 = vmul.f32 %v1375_v25, %v1284_v15  ;;  %v1384_v31 = vmul.f32 %v1376_v27, %v1284_v15 }
 0x349   : > { %v1387_v35 = vadd.f32 %v1383_v30, %v1379_v22  ;;  %v1388_v36 = vadd.f32 %v1384_v31, %v1380_v26  ;;  %v1369_v38 = vpop.permute.xlu1 %1368  ;;  %v1298_v41 = vpop.permute.xlu0 %1297  ;;  %v1409_v42 = vsel %vm1404_vm4, %v1400_v29, 0 }
 0x34a   : > { %2653 = vmatpush3.bf16.xpose.msra.mxu1 %v1409_v42 }
 0x34b   : > { %v1401_v46 = vpack.c.bf16 %v1387_v35, %v1387_v35  ;;  %2664 = vmatprep.subr.bf16.mxu1 %v3133_v6  ;;  %v1402_v48 = vpack.c.bf16 %v1388_v36, %v1388_v36 }
 0x34d   : > { %v1353_v49 = vpop.permute.xlu1 %1352  ;;  %v1314_v50 = vpop.permute.xlu0 %1313  ;;  %v1455_v40 = vsel %vm1404_vm4, %v1401_v46, 0  ;;  %v1501_v61 = vsel %vm1404_vm4, %v1402_v48, 0 }
 0x34e   : > { %v1377_v52 = vsel %vm1321_vm3, %v1353_v49, %v1369_v38  ;;  %v1324_v54 = vsel %vm1321_vm3, %v1298_v41, %v1314_v50  ;;  %2659 = vmatpush3.bf16.xpose.msra.mxu0 %v1455_v40 }
 0x34f   : > { %v1385_v57 = vmul.f32 %v1377_v52, %v1284_v15  ;;  %v1332_v58 = vmul.f32 %v1324_v54, %v1284_v15  ;;  %2670 = vmatprep.subr.bf16.mxu0 %v3133_v6 }
 0x351   : > { %v1389_v59 = vadd.f32 %v1385_v57, %v1381_v51  ;;  %v1300_v60 = vpop.permute.xlu1 %1299  ;;  %2655 = vmatmul.mubr.msk.bf16.vlgmr.msra.gmra.mrb[8].mxu1 %vm1404_vm4, %v1396_v56  ;;  %v1336_v1 = vadd.f32 %v1332_v58, %v1328_v39 }
 0x352   : > { %2665 = vmatpush3.bf16.xpose.msra.mxu1 %v1501_v61  ;;  %2666 = vmatprep.mubr.msk.bf16.mxu1 %vm3134_vm2, %v3133_v6 }
 0x353   : > { %v1403_v0 = vpack.c.bf16 %v1389_v59, %v1389_v59  ;;  %2676 = vmatprep.subr.bf16.mxu1 %v3133_v6  ;;  %v1398_v5 = vpack.c.bf16 %v1336_v1, %v1336_v1 }
 0x355   : > { %2661 = vmatmul.mubr.msk.bf16.vlgmr.msra.gmra.mrb[4].mxu0 %vm1404_vm4, %v1397_v62  ;;  %v1316_v2 = vpop.permute.xlu1 %1315  ;;  %v1547_v4 = vsel %vm1404_vm4, %v1403_v0, 0 }
 0x356   : > { %v1325_v63 = vsel %vm1321_vm3, %v1300_v60, %v1316_v2  ;;  %2671 = vmatpush3.bf16.xpose.msra.mxu0 %v1547_v4  ;;  %2672 = vmatprep.mubr.msk.bf16.mxu0 %vm3134_vm2, %v3133_v6 }
 0x357   : > { %v1333_v8 = vmul.f32 %v1325_v63, %v1284_v15  ;;  %2682 = vmatprep.subr.bf16.mxu0 %v3133_v6 }
 0x359   : > { %v1337_v9 = vadd.f32 %v1333_v8, %v1329_v7  ;;  %2667 = vmatmul.mubr.msk.bf16.vlgmr.msra.gmra.mrb[12].mxu1 %vm1404_vm4, %v1398_v5 }
 0x35a   : > { %2678 = vmatprep.mubr.msk.bf16.mxu1 %vm3134_vm2, %v3133_v6 }
 0x35b   : > { %v1399_v10 = vpack.c.bf16 %v1337_v9, %v1337_v9 }
 0x35d   : > { %2673 = vmatmul.mubr.msk.bf16.vlgmr.msra.gmra.mrb[8].mxu0 %vm1404_vm4, %v1399_v10 }
 0x35e   : > { %2684 = vmatprep.mubr.msk.bf16.mxu0 %vm3134_vm2, %v3133_v6 }
 0x424   : > { %v1445_v3 = vpop.f32.mrb[8].mxu1 }
 0x425   : > { %v1589_v13 = vmul.f32 0.35355338, %v1445_v3  ;;  %v2656_v14 = vpop.f32.mrb[9].mxu1 }
 0x426   : > { %v1448_v15 = vpop.f32.mrb[10].mxu1 }
 0x427   : > { %v2657_v16 = vpop.f32.mrb[11].mxu1  ;;  %v1593_v17 = vadd.f32 %v1589_v13, %v1395_v12 }
 0x428   : > { %v1491_v18 = vpop.f32.mrb[4].mxu0 }
 0x429   : > { %v1590_v19 = vmul.f32 0.35355338, %v1491_v18  ;;  %v2662_v21 = vpop.f32.mrb[5].mxu0  ;;  %v1597_v22 = vsel %vm1404_vm4, %v1593_v17, -inf }
 0x42a   : > { %v1494_v23 = vpop.f32.mrb[6].mxu0  ;;  %1598 = vmax.xlane.f32.xlu0 %v1597_v22 }
 0x42b   : > { %v2663_v24 = vpop.f32.mrb[7].mxu0  ;;  %v1594_v25 = vadd.f32 %v1590_v19, %v1395_v12 }
 0x42c   : > { %v1537_v34 = vpop.f32.mrb[12].mxu1 }
 0x42d   : > { %v1591_v26 = vmul.f32 0.35355338, %v1537_v34  ;;  %v2668_v37 = vpop.f32.mrb[13].mxu1  ;;  %v1600_v27 = vsel %vm1404_vm4, %v1594_v25, -inf }
 0x42e   : > { %1601 = vmax.xlane.f32.xlu1 %v1600_v27  ;;  %v1540_v28 = vpop.f32.mrb[14].mxu1 }
 0x42f   : > { %v2669_v29 = vpop.f32.mrb[15].mxu1  ;;  %v1595_v30 = vadd.f32 %v1591_v26, %v1395_v12 }
 0x430   : > { %v1583_v31 = vpop.f32.mrb[8].mxu0 }
 0x431   : > { %v1592_v32 = vmul.f32 0.35355338, %v1583_v31  ;;  %v2674_v33 = vpop.f32.mrb[9].mxu0  ;;  %v1603_v35 = vsel %vm1404_vm4, %v1595_v30, -inf }
 0x432   : > { %v1586_v36 = vpop.f32.mrb[10].mxu0  ;;  %1604 = vmax.xlane.f32.xlu0 %v1603_v35 }
 0x433   : > { %v2675_v38 = vpop.f32.mrb[11].mxu0  ;;  %v1596_v41 = vadd.f32 %v1592_v32, %v1395_v12 }
 0x435   : > { %v1606_v42 = vsel %vm1404_vm4, %v1596_v41, -inf }
 0x436   : > { %1607 = vmax.xlane.f32.xlu0 %v1606_v42 }
 0x43f   : > { %1138 = vrot.lane.b32.xlu1 %v3567_v20, %s3135_s22 }
 0x4b7   : > { %v1599_v43 = vpop.xlane.xlu0 %1598 }
 0x4b8   : > { %v1609_v45 = vsub.f32 %v1593_v17, %v1599_v43 }
 0x4ba   : > { %v1613_v46 = vmul.f32 1.442695, %v1609_v45 }
 0x4bb   : > { %v1602_v47 = vpop.xlane.xlu1 %1601 }
 0x4bc   : > { %2887 = vpow2.f32 %v1613_v46  ;;  %v1610_v48 = vsub.f32 %v1594_v25, %v1602_v47 }
 0x4be   : > { %v1615_v49 = vmul.f32 1.442695, %v1610_v48 }
 0x4bf   : > { %v1605_v54 = vpop.xlane.xlu0 %1604  ;;  %v1139_v0 = vpop.permute.xlu1 %1138 }
 0x4c0   : > { %2889 = vpow2.f32 %v1615_v49  ;;  %v1611_v55 = vsub.f32 %v1595_v30, %v1605_v54 }
 0x4c2   : > { %v1617_v57 = vmul.f32 1.442695, %v1611_v55 }
 0x4c3   : > { %v1608_v56 = vpop.xlane.xlu0 %1607 }
 0x4c4   : > { %v1612_v58 = vsub.f32 %v1596_v41, %v1608_v56  ;;  %2891 = vpow2.f32 %v1617_v57 }
 0x4c6   : > { %v3705_v50 = vpop.eup %2887  ;;  %v1619_v59 = vmul.f32 1.442695, %v1612_v58 }
 0x4c7   : > { %v1621_v40 = vsel %vm1404_vm4, %v3705_v50, 0.0 }
 0x4c8   : > { %1622 = vadd.xlane.f32.xlu1 %v1621_v40  ;;  %2893 = vpow2.f32 %v1619_v59 }
 0x4ca   : > { %v3709_v51 = vpop.eup %2889 }
 0x4cb   : > { %v1624_v52 = vsel %vm1404_vm4, %v3709_v51, 0.0 }
 0x4cc   : > { %1625 = vadd.xlane.f32.xlu0 %v1624_v52 }
 0x4ce   : > { %v3717_v39 = vpop.eup %2891 }
 0x4cf   : > { %v1627_v60 = vsel %vm1404_vm4, %v3717_v39, 0.0 }
 0x4d2   : > { %v3721_v61 = vpop.eup %2893 }
 0x4d3   : > { %v1630_v62 = vsel %vm1404_vm4, %v3721_v61, 0.0 }
 0x4d9   : > { %1144 = vrot.lane.b32.xlu1 %v3567_v20, %s3137_s25 }
 0x4e2   : > { %1141 = vrot.lane.b32.xlu0 %v3567_v20, %s3136_s24 }
 0x4fd   : > { %1628 = vadd.xlane.f32.xlu1 %v1627_v60 }
 0x501   : > { %1631 = vadd.xlane.f32.xlu0 %v1630_v62 }
 0x555   : > { %v1623_v1 = vpop.xlane.xlu1 %1622 }
 0x556   : > { %2895 = vrcp.f32 %v1623_v1 }
 0x559   : > { %v1145_v2 = vpop.permute.xlu1 %1144  ;;  %v1626_v4 = vpop.xlane.xlu0 %1625 }
 0x55a   : > { %v1163_v63 = vcombine.low %v1139_v0, %v1145_v2  ;;  %v1164_v5 = vcombine.high %v1139_v0, %v1145_v2  ;;  %2897 = vrcp.f32 %v1626_v4 }
 0x55c   : > { %v1171_v10 = vrot.slane %v1163_v63, %v3579_v44  ;;  %v1178_v11 = vrot.slane %v1164_v5, %v3579_v44 }
 0x55d   : > { %v1142_v7 = vpop.permute.xlu0 %1141 }
 0x55e   : > { %v1147_v8 = vcombine.low %v3567_v20, %v1142_v7  ;;  %v1148_v9 = vcombine.high %v3567_v20, %v1142_v7 }
 0x560   : > { %v1155_v3 = vrot.slane %v1147_v8, %v3579_v44  ;;  %v1162_v12 = vrot.slane %v1148_v9, %v3579_v44  ;;  %v2896_v31 = vpop.eup %2895 }
 0x561   : > { %v1637_v46 = vmul.f32 %v2896_v31, %v3705_v50 }
 0x562   : > { %v1179_v13 = vcombine.low %v1155_v3, %v1171_v10  ;;  %v1180_v14 = vcombine.high %v1155_v3, %v1171_v10  ;;  %v1195_v15 = vcombine.low %v1162_v12, %v1178_v11  ;;  %v1196_v16 = vcombine.high %v1162_v12, %v1178_v11 }
 0x563   : > { %v1641_v56 = vpack.c.bf16 %v1637_v46, %v1637_v46  ;;  %v2874_v46 = vld [vmem:[%s3519_s29 + $0x8] sm:$0xff]  }
 0x564   : > { %v1187_v17 = vrot.slane %v1179_v13, %v3586_v53  ;;  %v1194_v18 = vrot.slane %v1180_v14, %v3586_v53  ;;  %v1203_v20 = vrot.slane %v1195_v15, %v3586_v53  ;;  %v1210_v19 = vrot.slane %v1196_v16, %v3586_v53  ;;  %v2898_v38 = vpop.eup %2897 }
 0x565   : > { %v1638_v47 = vmul.f32 %v2898_v38, %v3709_v51 }
 0x566   : > { %v1215_v21 = vcombine.low %v1187_v17, %v1194_v18  ;;  %v2546_v22 = vcombine.high %v1187_v17, %v1194_v18  ;;  %v1231_v23 = vcombine.low %v1203_v20, %v1210_v19  ;;  %v2547_v24 = vcombine.high %v1203_v20, %v1210_v19 }
 0x567   : > { %v1642_v57 = vpack.c.bf16 %v1638_v47, %v1638_v47 }
 0x568   : > { %v1222_v25 = vrot.slane %v1215_v21, %v3579_v44  ;;  %v1230_v34 = vrot.slane %v2546_v22, %v3579_v44  ;;  %v1238_v26 = vrot.slane %v1231_v23, %v3579_v44  ;;  %v1246_v37 = vrot.slane %v2547_v24, %v3579_v44 }
 0x56a   : > { %v1247_v27 = vcombine.low %v1222_v25, %v1230_v34  ;;  %v1263_v28 = vcombine.low %v1238_v26, %v1246_v37  ;;  %v1248_v29 = vcombine.high %v1222_v25, %v1230_v34  ;;  %v1264_v30 = vcombine.high %v1238_v26, %v1246_v37 }
 0x56c   : > { %v1255_v32 = vrot.slane %v1247_v27, %v3586_v53  ;;  %v1271_v33 = vrot.slane %v1263_v28, %v3586_v53  ;;  %v1262_v35 = vrot.slane %v1248_v29, %v3586_v53  ;;  %v1278_v36 = vrot.slane %v1264_v30, %v3586_v53  ;;  %v2873_v28 = vld [vmem:[%s3519_s29] sm:$0xff]   ;;  %s3142_s29 = smov 16  }
 0x56e   : > { %v1279_v41 = vcombine.low %v1255_v32, %v1271_v33  ;;  %v1280_v42 = vcombine.high %v1255_v32, %v1271_v33  ;;  %v1281_v43 = vcombine.low %v1262_v35, %v1278_v36  ;;  %v1282_v45 = vcombine.high %v1262_v35, %v1278_v36 }
 0x570   : > { %v1645_v48 = vpack.c.bf16 %v1279_v41, %v1279_v41  ;;  %v1646_v49 = vpack.c.bf16 %v1280_v42, %v1280_v42  ;;  %v1647_v54 = vpack.c.bf16 %v1281_v43, %v1281_v43  ;;  %v1648_v55 = vpack.c.bf16 %v1282_v45, %v1282_v45 }
 0x572   : > { %v1654_v40 = vsel %vm1652_vm6, %v1645_v48, 0  ;;  %v1700_v52 = vsel %vm1652_vm6, %v1646_v49, 0  ;;  %v1746_v50 = vsel %vm1652_vm6, %v1647_v54, 0  ;;  %v1792_v51 = vsel %vm1652_vm6, %v1648_v55, 0 }
 0x573   : > { %2677 = vmatpush3.bf16.msra.mxu1 %v1654_v40  ;;  %2683 = vmatpush3.bf16.msra.mxu0 %v1700_v52 }
 0x574   : > { %2688 = vmatprep.subr.bf16.mxu1 %v3133_v6  ;;  %2694 = vmatprep.subr.bf16.mxu0 %v3133_v6 }
 0x576   : > { %2679 = vmatmul.mubr.msk.bf16.vlgmr.msra.gmra.mrb[16].mxu1 %vm1404_vm4, %v1641_v56  ;;  %2685 = vmatmul.mubr.msk.bf16.vlgmr.msra.gmra.mrb[12].mxu0 %vm1404_vm4, %v1642_v57 }
 0x577   : > { %2689 = vmatpush3.bf16.msra.mxu1 %v1746_v50  ;;  %2695 = vmatpush3.bf16.msra.mxu0 %v1792_v51 }
 0x578   : > { %2690 = vmatprep.mubr.msk.bf16.mxu1 %vm3134_vm2, %v3133_v6  ;;  %2696 = vmatprep.mubr.msk.bf16.mxu0 %vm3134_vm2, %v3133_v6 }
 0x579   : > { %2700 = vmatprep.subr.bf16.mxu1 %v3133_v6  ;;  %2708 = vmatprep.subr.bf16.mxu0 %v3133_v6 }
 0x58a   : > { %v1629_v58 = vpop.xlane.xlu1 %1628 }
 0x58b   : > { %2899 = vrcp.f32 %v1629_v58 }
 0x58e   : > { %v1632_v59 = vpop.xlane.xlu0 %1631 }
 0x58f   : > { %2901 = vrcp.f32 %v1632_v59 }
 0x595   : > { %v2900_v60 = vpop.eup %2899 }
 0x596   : > { %v1639_v62 = vmul.f32 %v2900_v60, %v3717_v39 }
 0x598   : > { %v1643_v0 = vpack.c.bf16 %v1639_v62, %v1639_v62 }
 0x599   : > { %v2902_v1 = vpop.eup %2901 }
 0x59a   : > { %v1640_v2 = vmul.f32 %v2902_v1, %v3721_v61  ;;  %2691 = vmatmul.mubr.msk.bf16.vlgmr.msra.gmra.mrb[20].mxu1 %vm1404_vm4, %v1643_v0 }
 0x59b   : > { %2704 = vmatprep.mubr.msk.bf16.mxu1 %vm3134_vm2, %v3133_v6  ;;  %2701 = vmatpush3.bf16.msra.mxu1 %v2873_v28 }
 0x59c   : > { %v1644_v4 = vpack.c.bf16 %v1640_v2, %v1640_v2  ;;  %2702 = vmatprep.subr.bf16.mxu1 %v3133_v6 }
 0x59e   : > { %2697 = vmatmul.mubr.msk.bf16.vlgmr.msra.gmra.mrb[16].mxu0 %vm1404_vm4, %v1644_v4  ;;  %v2909_v4 = vld [vmem:[#allocation2] sm:$0xff] }
 0x59f   : > { %2712 = vmatprep.mubr.msk.bf16.mxu0 %vm3134_vm2, %v3133_v6  ;;  %2703 = vmatpush3.bf16.msra.mxu1 %v2874_v46 }
 0x5a0   : > { %2716 = vmatprep.subr.bf16.mxu1 %v3133_v6 }
 0x649   : > { %v1690_v63 = vpop.f32.mrb[16].mxu1  ;;  %v1736_v5 = vpop.f32.mrb[12].mxu0 }
 0x64a   : > { %v2680_v7 = vpop.f32.mrb[17].mxu1  ;;  %v2686_v8 = vpop.f32.mrb[13].mxu0 }
 0x64b   : > { %v1693_v39 = vpop.f32.mrb[18].mxu1  ;;  %v1739_v9 = vpop.f32.mrb[14].mxu0 }
 0x64c   : > { %v2681_v10 = vpop.f32.mrb[19].mxu1  ;;  %v2687_v11 = vpop.f32.mrb[15].mxu0 }
 0x64d   : > { %v2875_v10 = vld [vmem:[%s3989_s10] sm:$0xff]  }
 0x64e   : > { %v2876_v11 = vld [vmem:[%s533_s20] sm:$0xff]   ;;  %2709 = vmatpush3.bf16.msra.mxu0 %v2875_v10 }
 0x64f   : > { %2710 = vmatprep.subr.bf16.mxu0 %v3133_v6 }
 0x66d   : > { %v1782_v61 = vpop.f32.mrb[20].mxu1 }
 0x66e   : > { %v1834_v3 = vcombine.low %v1690_v63, %v1782_v61  ;;  %v1835_v12 = vcombine.high %v1690_v63, %v1782_v61  ;;  %v2692_v13 = vpop.f32.mrb[21].mxu1  ;;  %v2877_v61 = vld [vmem:[%s3990_s23 + $0x8] sm:$0xff]  }
 0x66f   : > { %v1785_v14 = vpop.f32.mrb[22].mxu1  ;;  %2711 = vmatpush3.bf16.msra.mxu0 %v2877_v61 }
 0x670   : > { %v2693_v15 = vpop.f32.mrb[23].mxu1  ;;  %v1842_v21 = vrot.slane %v1834_v3, %v3579_v44  ;;  %v1849_v22 = vrot.slane %v1835_v12, %v3579_v44  ;;  %v2878_v3 = vld [vmem:[%s533_s20 + $0x8] sm:$0xff]   ;;  %2724 = vmatprep.subr.bf16.mxu0 %v3133_v6 }
 0x671   : > { %v1828_v16 = vpop.f32.mrb[16].mxu0 }
 0x672   : > { %v1850_v17 = vcombine.low %v1736_v5, %v1828_v16  ;;  %v1851_v18 = vcombine.high %v1736_v5, %v1828_v16  ;;  %v2698_v20 = vpop.f32.mrb[17].mxu0  ;;  %v2561_v16 = vld [vmem:[%s645_s13] ss:$0 sm:$0xff] }
 0x673   : > { %v1831_v19 = vpop.f32.mrb[18].mxu0 }
 0x674   : > { %v1858_v23 = vrot.slane %v1850_v17, %v3579_v44  ;;  %v1865_v24 = vrot.slane %v1851_v18, %v3579_v44  ;;  %v2699_v25 = vpop.f32.mrb[19].mxu0  ;;  %v2879_v19 = vld [vmem:[%s3524_s6] sm:$0xff]  }
 0x675   : > { %v2884_v25 = vld [vmem:[%s3524_s6 + $0x28] sm:$0xff]  }
 0x676   : > { %v1866_v34 = vcombine.low %v1842_v21, %v1858_v23  ;;  %v1867_v26 = vcombine.high %v1842_v21, %v1858_v23  ;;  %v1882_v37 = vcombine.low %v1849_v22, %v1865_v24  ;;  %v1883_v27 = vcombine.high %v1849_v22, %v1865_v24  ;;  %v2880_v21 = vld [vmem:[%s3524_s6 + $0x8] sm:$0xff]   ;;  %v2881_v22 = vld [vmem:[%s3524_s6 + $0x10] sm:$0xff]   ;;  %v2882_v23 = vld [vmem:[%s3524_s6 + $0x18] sm:$0xff]  }
 0x677   : > { %v2883_v24 = vld [vmem:[%s3524_s6 + $0x20] sm:$0xff]  }
 0x678   : > { %v1874_v29 = vrot.slane %v1866_v34, %v3586_v53  ;;  %v1881_v30 = vrot.slane %v1867_v26, %v3586_v53  ;;  %v1890_v31 = vrot.slane %v1882_v37, %v3586_v53  ;;  %v1897_v32 = vrot.slane %v1883_v27, %v3586_v53 }
 0x67a   : > { %v1902_v33 = vcombine.low %v1874_v29, %v1881_v30  ;;  %v2556_v35 = vcombine.high %v1874_v29, %v1881_v30  ;;  %v1918_v36 = vcombine.low %v1890_v31, %v1897_v32  ;;  %v2557_v38 = vcombine.high %v1890_v31, %v1897_v32 }
 0x67c   : > { %v1909_v41 = vrot.slane %v1902_v33, %v3579_v44  ;;  %v1917_v42 = vrot.slane %v2556_v35, %v3579_v44  ;;  %v1925_v43 = vrot.slane %v1918_v36, %v3579_v44  ;;  %v1933_v45 = vrot.slane %v2557_v38, %v3579_v44 }
 0x67e   : > { %v1935_v47 = vcombine.high %v1909_v41, %v1917_v42  ;;  %v1951_v48 = vcombine.high %v1925_v43, %v1933_v45  ;;  %v1934_v49 = vcombine.low %v1909_v41, %v1917_v42  ;;  %v1950_v40 = vcombine.low %v1925_v43, %v1933_v45 }
 0x680   : > { %v1949_v52 = vrot.slane %v1935_v47, %v3586_v53  ;;  %v1965_v54 = vrot.slane %v1951_v48, %v3586_v53  ;;  %v1942_v55 = vrot.slane %v1934_v49, %v3586_v53  ;;  %v1958_v56 = vrot.slane %v1950_v40, %v3586_v53 }
 0x682   : > { %v1968_v57 = vcombine.low %v1949_v52, %v1965_v54  ;;  %v1967_v50 = vcombine.high %v1942_v55, %v1958_v56  ;;  %v1969_v51 = vcombine.high %v1949_v52, %v1965_v54  ;;  %v1966_v44 = vcombine.low %v1942_v55, %v1958_v56 }
 0x684   : > { %1975 = vrot.lane.b32.xlu1 %v1968_v57, %s3142_s29  ;;  %1971 = vrot.lane.b32.xlu0 %v1967_v50, %s3143_s8 }
 0x688   : > { %1979 = vrot.lane.b32.xlu1 %v1969_v51, %s3144_s19 }
 0x6f6   : > { %v1976_v58 = vpop.permute.xlu1 %1975  ;;  %v1972_v59 = vpop.permute.xlu0 %1971 }
 0x6f7   : > { %v1982_v60 = vsel %vm1404_vm4, %v1966_v44, %v1972_v59 }
 0x6f8   : > { %v1984_v53 = vsel %vm1983_vm7, %v1982_v60, %v1976_v58 }
 0x6fa   : > { %v1980_v62 = vpop.permute.xlu1 %1979 }
 0x6fb   : > { %v1986_v0 = vsel %vm1985_vm8, %v1984_v53, %v1980_v62 }
 0x6fc   : > { %v1987_v1 = vpack.c.bf16 %v1986_v0, %v1986_v0 }
 0x6fe   : > { %2705 = vmatmul.mubr.msk.bf16.vlgmr.msra.gmra.mrb[24].mxu1 %vm656_vm1, %v1987_v1 }
 0x6ff   : > { %2720 = vmatprep.mubr.msk.bf16.mxu1 %vm3134_vm2, %v3133_v6  ;;  %2717 = vmatpush3.bf16.msra.mxu1 %v2876_v11 }
 0x700   : > { %2718 = vmatprep.subr.bf16.mxu1 %v3133_v6 }
 0x703   : > { %2719 = vmatpush3.bf16.msra.mxu1 %v2878_v3 }
 0x7d1   : > { %v2041_v2 = vpop.f32.mrb[24].mxu1 }
 0x7d2   : > { %v3791_v63 = vadd.f32 %v2909_v4, %v2041_v2  ;;  %v2706_v5 = vpop.f32.mrb[25].mxu1 }
 0x7d3   : > { %v2044_v7 = vpop.f32.mrb[26].mxu1 }
 0x7d4   : > { %v2707_v8 = vpop.f32.mrb[27].mxu1  ;;  %v2048_v39 = vmul.f32 %v3791_v63, %v3791_v63 }
 0x7d6   : > { %v2049_v9 = vsel %vm656_vm1, %v2048_v39, 0.0 }
 0x7d7   : > { %2050 = vadd.xlane.f32.xlu0 %v2049_v9 }
 0x864   : > { %v2051_v12 = vpop.xlane.xlu0 %2050 }
 0x865   : > { %v2052_v13 = vmul.f32 0.03125, %v2051_v12 }
 0x867   : > { %v2053_v14 = vadd.f32 1e-06, %v2052_v13 }
 0x869   : > { %2903 = vrsqrt.f32 %v2053_v14 }
 0x873   : > { %v2904_v15 = vpop.eup %2903 }
 0x874   : > { %v2055_v17 = vmul.f32 %v2904_v15, %v3791_v63 }
 0x876   : > { %v2063_v18 = vmul.f32 %v2561_v16, %v2055_v17 }
 0x878   : > { %v2064_v20 = vpack.c.bf16 %v2063_v18, %v2063_v18 }
 0x87a   : > { %2713 = vmatmul.mubr.msk.bf16.vlgmr.msra.gmra.mrb[20].mxu0 %vm656_vm1, %v2064_v20  ;;  %2721 = vmatmul.mubr.msk.bf16.vlgmr.msra.gmra.mrb[28].mxu1 %vm656_vm1, %v2064_v20 }
 0x87b   : > { %2736 = vmatprep.mubr.msk.bf16.mxu0 %vm3134_vm2, %v3133_v6  ;;  %2725 = vmatpush3.bf16.msra.mxu0 %v2879_v19 }
 0x87c   : > { %2726 = vmatprep.subr.bf16.mxu0 %v3133_v6 }
 0x87f   : > { %2727 = vmatpush3.bf16.msra.mxu0 %v2880_v21 }
 0x880   : > { %2728 = vmatprep.subr.bf16.mxu0 %v3133_v6 }
 0x883   : > { %2729 = vmatpush3.bf16.msra.mxu0 %v2881_v22 }
 0x884   : > { %2730 = vmatprep.subr.bf16.mxu0 %v3133_v6 }
 0x887   : > { %2731 = vmatpush3.bf16.msra.mxu0 %v2882_v23 }
 0x888   : > { %2732 = vmatprep.subr.bf16.mxu0 %v3133_v6 }
 0x88b   : > { %2733 = vmatpush3.bf16.msra.mxu0 %v2883_v24 }
 0x88c   : > { %2734 = vmatprep.subr.bf16.mxu0 %v3133_v6 }
 0x88f   : > { %2735 = vmatpush3.bf16.msra.mxu0 %v2884_v25 }
 0x94d   : > { %v2118_v34 = vpop.f32.mrb[20].mxu0  ;;  %v2174_v26 = vpop.f32.mrb[28].mxu1 }
 0x94e   : > { %v2568_v37 = vmul.f32 -1.442695, %v2118_v34  ;;  %v2714_v27 = vpop.f32.mrb[21].mxu0  ;;  %v2722_v28 = vpop.f32.mrb[29].mxu1 }
 0x94f   : > { %v2121_v29 = vpop.f32.mrb[22].mxu0  ;;  %v2177_v30 = vpop.f32.mrb[30].mxu1 }
 0x950   : > { %2905 = vpow2.f32 %v2568_v37  ;;  %v2715_v31 = vpop.f32.mrb[23].mxu0  ;;  %v2723_v32 = vpop.f32.mrb[31].mxu1 }
 0x95a   : > { %v2906_v33 = vpop.eup %2905 }
 0x95b   : > { %v2183_v35 = vadd.f32 1.0, %v2906_v33 }
 0x95d   : > { %2907 = vrcp.f32 %v2183_v35 }
 0x967   : > { %v2908_v36 = vpop.eup %2907 }
 0x968   : > { %v2186_v38 = vmul.f32 %v2908_v36, %v2118_v34 }
 0x96a   : > { %v2187_v41 = vmul.f32 %v2186_v38, %v2174_v26 }
 0x96c   : > { %v2188_v6 = vpack.c.bf16 %v2187_v41, %v2187_v41 }
 0x96e   : > { %2737 = vmatmul.mubr.msk.bf16.vlgmr.msra.gmra.mrb[24].mxu0 %vm2237_vm9, %v2188_v6 }
 0xa3e   : > { %2286 = sbr.rel (%p2576_p11) target bundleno = 2637 (0xa4d), region = 88 }
 0xa41   : > { %v2275_v42 = vpop.f32.mrb[24].mxu0 }
 0xa42   : > { %v2281_v43 = vadd.f32 %v2275_v42, %v3791_v63  ;;  %v2738_v45 = vpop.f32.mrb[25].mxu0 }
 0xa43   : > { %v2278_v46 = vpop.f32.mrb[26].mxu0 }
 0xa44   : > { %2282 = vst.msk [vmem:[#allocation2] sm:$0xff] %vm656_vm1, %v2281_v43  ;;  %v2739_v47 = vpop.f32.mrb[27].mxu0 }
 0xa4b   : > { %v2287_v48 = vld [vmem:[#allocation2] sm:$0xff] }
 0xa4c   : > { %2288 = vst.msk [vmem:[%s3535_s5] sm:$0xff] %vm656_vm1, %v2287_v48 }
 0xa4d PF: > { %s3992_s6 = sld [smem:[#allocation18_spill]]  ;;  %s3993_s20 = sld [smem:[#allocation39_spill]] }
 0xa4e   : > { %s2303_s1 = sshll.u32 %s3535_s5, 4  ;;  %s2290_s7 = scalar_lea.sflag [#allocation5], %s3482_s21  ;;  %s2304_s1 = int_to_ptr.vmem [resolvable:$true] %s2303_s1 }
 0xa4f   : > { %s3000_s27 = scalar_lea.vmem %s2304_s1, 128  ;;  %p3994_p9 = scmp.ne.s32.totalorder %s3965_s28, 0 }
 0xa50   : > { %p3001_p3 = scmp.ne.s32.totalorder %s2304_s1, %s3000_s27  ;;  %s3145_s22 = smov [#allocation9]  }
 0xa51   : > { %s3004_s24 = sshll.u32 %s3145_s22, 4  ;;  %s3005_s24 = int_to_ptr.vmem [resolvable:$false] %s3004_s24 }
 0xa52   : > { %p3002_p5 = pnand %p3001_p3, %p3994_p9  ;;  %s3006_s25 = scalar_lea.vmem %s3005_s24, 256 }
 0xa53   : > { %s2578_s13 = sshll.u32 %s3992_s6, 7  ;;  %p3007_p13 = scmp.lt.s32.totalorder %s2304_s1, %s3005_s24 }
 0xa54   : > { %s3837_s0 = scalar_lea.hbm %s3993_s20, %s2578_s13  ;;  %p3003_p8 = pneg %p3002_p5 }
 0xa55   : > { %p3008_p12 = scmp.lt.s32.totalorder %s3006_s25, %s3000_s27 }
 0xa57   : > { %p3009_p2 = por %p3008_p12, %p3007_p13 }
 0xa59   : > { %p3010_p1 = pnand %p3009_p2, %p3003_p8 }
 0xa5b   : > { %3013 = shalt.err (!%p3010_p1)
}
 0xa5c   : > { %s3014_s21 = scalar_lea.hbm %s3837_s0, 128  ;;  %s3018_s17 = scalar_lea.hbm %s3993_s20, 256 }
 0xa5d   : > { %p3015_p10 = scmp.ne.s32.totalorder %s3837_s0, %s3014_s21  ;;  %p3019_p7 = scmp.lt.u32.totalorder %s3837_s0, %s3993_s20 }
 0xa5e   : > { %p3020_p4 = scmp.lt.u32.totalorder %s3018_s17, %s3014_s21  ;;  %p3022_p3 = scmp.lt.u32.totalorder %s3014_s21, %s3837_s0 }
 0xa5f   : > { %p3016_p0 = pnand %p3015_p10, %p3994_p9 }
 0xa60   : > { %p3021_p11 = por %p3020_p4, %p3019_p7 }
 0xa61   : > { %p3017_p6 = pneg %p3016_p0 }
 0xa62   : > { %p3023_p5 = por %p3022_p3, %p3021_p11 }
 0xa64   : > { %p3024_p8 = pnand %p3023_p5, %p3017_p6 }
 0xa66   : > { %3027 = shalt.err (!%p3024_p8)
}
 0xa67   : > { %2747 = dma.vmem_to_hbm [thread:$0]  (%p3994_p9), %s2304_s1, 128, %s3837_s0, %s2290_s7  }
 0xa68 PF: > { %s3995_s9 = sld [smem:[#allocation21_spill]]  ;;  %s3996_s12 = sld [smem:[#allocation15_spill]] }
 0xa69   : > { %s3997_s2 = sld [smem:[#allocation26_spill]] }
 0xa6e   : > { %p2764_p13 = scmp.ge.s32.totalorder %s3995_s9, 2  ;;  %s2315_s3 = sand.u32 1, %s3996_s12  }
 0xa6f   : > { %p3998_p12 = scmp.ne.s32.totalorder %s3997_s2, 0  ;;  %s2316_s29 = scalar_lea.sflag [#allocation5], %s2315_s3 }
 0xa71   : > { %p2760_p2 = pnand %p2764_p13, %p3998_p12 }
 0xa73   : > { %3081 = dma.done.wait (!%p2760_p2), %s2316_s29, 128  }
 0xa74   : > { %3083 = vsyncadd (!%p2760_p2), %s2316_s29, 4294967168  ;;  %s31_s13 = sadd.s32 1, %s3995_s9   ;;  %s3999_s21 = sld [smem:[#allocation13_spill]] }
 0xa75   : > { %p28_p1 = scmp.ge.s32.totalorder %s31_s13, 6   ;;  %s4000_s22 = sld [smem:[#allocation14_spill]] }
 0xa76   : > { %s4001_s23 = sld [smem:[#allocation23_spill]]  ;;  %s4002_s24 = sld [smem:[#allocation16_spill]] }
 0xa77   : > { %s4003_s25 = sld [smem:[#allocation17_spill]]  ;;  %s4004_s26 = sld [smem:[#allocation25_spill]] }
 0xa78   : > { %s4005_s27 = sld [smem:[#allocation19_spill]]  ;;  %s4006_s28 = sld [smem:[#allocation20_spill]] }
 0xa79   : > { %s4007_s29 = sld [smem:[#allocation22_spill]]  ;;  %s4008_s30 = sld [smem:[#allocation24_spill]] }
 0xa7a   :  { %30 = sbr.rel (!%p28_p1) target bundleno = 25 (0x19), region = 166 }
 0xa81   :  { %2321 = vsyncpa [#allocation4], 1 }
 0xa82   :  { %2323 = vsyncpa [#allocation4 + $0x1], 1 }
 0xa83   :  { %2324 = vsyncpa [#allocation7], 1 }
 0xa84   :  { %2326 = vsyncpa [#allocation7 + $0x1], 1 }
 0xa85   :  { %2327 = vsyncpa [#allocation5], 1 }
 0xa86   :  { %2329 = vsyncpa [#allocation5 + $0x1], 1 }

</bundles_post_ra>
